<compile_context>
chip_gen: v6e
topology: v6e:2x2x1
jax: 0.10.0
libtpu: 0.0.40
codegen_flags: <defaults>
</compile_context>

<pallas_src>
import functools
import math

import jax
import jax.numpy as jnp
from jax.experimental import pallas as pl
from jax.experimental.pallas import tpu as pltpu


# ----------------------------- Pallas kernel -------------------------------

def _encoder_attn_kernel(x_ref, w_ref, out_ref, *, n_layers, n_heads, d_head,
                         scale):
    """One grid step == one view (0: series/patch_num, 1: prior/patch_size).

    x_ref   : (1, B, N, D)         bf16 input view
    w_ref   : (1, D, 2*L*H*dh)     bf16 fused Q/K projections for all layers,
                                   columns ordered (layer, q/k, head, dh)
    out_ref : (1, B, L*H, N*N)     f32 attention probabilities (lane dense)
    """
    _, B, N, D = x_ref.shape
    L, H, dh = n_layers, n_heads, d_head
    HD = H * dh

    # Single lane-dense projection for Q and K of every layer/head:
    # (B*N, D) @ (D, 2*L*H*dh), bf16 operands, f32 accumulation on the MXU.
    x2 = x_ref[0].reshape(B * N, D)                              # bf16
    proj = jnp.dot(x2, w_ref[0],
                   preferred_element_type=jnp.float32)           # (B*N, 2*L*HD)

    # Per-(layer, head) QK^T, batched over the batch dim only (single batch
    # dim — the documented Mosaic-supported batched-matmul pattern).
    scores = []
    for l in range(L):
        for h in range(H):
            q_col = (2 * l + 0) * HD + h * dh
            k_col = (2 * l + 1) * HD + h * dh
            qh = proj[:, q_col:q_col + dh].reshape(B, N, dh).astype(jnp.bfloat16)
            kh = proj[:, k_col:k_col + dh].reshape(B, N, dh).astype(jnp.bfloat16)
            scores.append(jnp.einsum('bnd,bmd->bnm', qh, kh,
                                     preferred_element_type=jnp.float32))

    # (B, L*H, N, N) f32; 1/sqrt(dh) applied to the f32 scores.
    s = jnp.stack(scores, axis=1) * scale

    # One numerically-stable softmax for all layers/heads, entirely in f32.
    m = jnp.max(s, axis=-1, keepdims=True)
    e = jnp.exp(s - m)
    denom = jnp.sum(e, axis=-1, keepdims=True)
    attn = e * pl.reciprocal(denom, approx=True)

    # Single dense store: (B, L*H, N*N) -> last two dims (8, 256) per example
    # config, fully packed sublanes/lanes, unmasked vst.
    out_ref[0] = attn.reshape(B, L * H, N * N).astype(out_ref.dtype)


# ------------------------------ wrapper -------------------------------------

def _fuse_view_weights(layer_params_list, wq_key, wk_key):
    """Per-layer per-head (H, D, dh) weights -> (D, 2*L*H*dh).

    Column ordering is (layer, q/k, head, dh), matching the kernel's slicing.
    """
    mats = []
    for p in layer_params_list:
        for w in (p[wq_key], p[wk_key]):
            H, D, dh = w.shape
            mats.append(jnp.transpose(w, (1, 0, 2)).reshape(D, H * dh))
    return jnp.concatenate(mats, axis=-1)


def encoder_attention(layer_params_list, x_patch_size, x_patch_num):
    """All layers + both views in a single Pallas call with grid=(2,).

    Returns (series_list, prior_list) of (B, H, N, N) arrays, one per layer.
    """
    B, N, D = x_patch_num.shape
    H, _, dh = layer_params_list[0]["wq_num"].shape
    L = len(layer_params_list)
    HD = H * dh
    C = 2 * L * HD
    scale = 1.0 / math.sqrt(dh)

    # View-major: view 0 -> series (patch_num view), view 1 -> prior
    # (patch_size view).  Each x view is DMA'd exactly once.
    # Pre-cast big operands to bf16 outside the kernel (halves input DMA bytes
    # and removes per-step VPU converts; accumulation / softmax stay f32).
    x_views = jnp.stack([x_patch_num, x_patch_size], axis=0).astype(jnp.bfloat16)
    w_views = jnp.stack(
        [_fuse_view_weights(layer_params_list, "wq_num", "wk_num"),
         _fuse_view_weights(layer_params_list, "wq_size", "wk_size")],
        axis=0).astype(jnp.bfloat16)                         # (2, D, C)

    kernel = functools.partial(_encoder_attn_kernel, n_layers=L, n_heads=H,
                               d_head=dh, scale=scale)

    out = pl.pallas_call(
        kernel,
        out_shape=jax.ShapeDtypeStruct((2, B, L * H, N * N), jnp.float32),
        grid_spec=pltpu.PrefetchScalarGridSpec(
            num_scalar_prefetch=0,
            grid=(2,),                                  # one step per view
            in_specs=[
                pl.BlockSpec((1, B, N, D), lambda v: (v, 0, 0, 0)),
                pl.BlockSpec((1, D, C), lambda v: (v, 0, 0)),
            ],
            out_specs=pl.BlockSpec((1, B, L * H, N * N),
                                   lambda v: (v, 0, 0, 0)),
        ),
        compiler_params=pltpu.CompilerParams(
            # extent-2 parallel axis -> both v7x TensorCores, one view each.
            dimension_semantics=("parallel",)),
        # TODO(synk): when scaling B or N, tile out_specs over N (the
        # double-buffered B*L*H*N^2 output block is the first v7x VMEM risk)
        # and set vmem_limit_bytes explicitly.
    )(x_views, w_views)

    attn = out.reshape(2, B, L, H, N, N)
    series_list = [attn[0, :, l] for l in range(L)]
    prior_list = [attn[1, :, l] for l in range(L)]
    return series_list, prior_list


# --------------------------- "AttnLayer" + Encoder --------------------------

def init_layer_params(key, d_model, n_heads, d_head):
    ks = jax.random.split(key, 4)
    std = 0.02
    shape = (n_heads, d_model, d_head)
    return {
        "wq_num": std * jax.random.normal(ks[0], shape, jnp.float32),
        "wk_num": std * jax.random.normal(ks[1], shape, jnp.float32),
        "wq_size": std * jax.random.normal(ks[2], shape, jnp.float32),
        "wk_size": std * jax.random.normal(ks[3], shape, jnp.float32),
    }


def encoder_forward(layer_params_list, x_patch_size, x_patch_num, x_ori,
                    patch_index, attn_mask=None):
    """Mirrors Encoder.forward: returns ([series]*L, [prior]*L)."""
    # TODO(synk): x_ori, patch_index and attn_mask are accepted for signature
    # parity but unused — the concrete attention layer class is not defined in
    # the reference module (and Encoder.forward never applies self.norm).
    del x_ori, patch_index, attn_mask
    return encoder_attention(layer_params_list, x_patch_size, x_patch_num)


# ------------------------------ pure-JAX reference ---------------------------

def _reference_attention(x, wq, wk):
    dh = wq.shape[-1]
    q = jnp.einsum('bnd,hdk->bhnk', x, wq)
    k = jnp.einsum('bnd,hdk->bhnk', x, wk)
    s = jnp.einsum('bhnk,bhmk->bhnm', q, k) / jnp.sqrt(jnp.float32(dh))
    return jax.nn.softmax(s, axis=-1)


# --------------------------------- driver -----------------------------------

if __name__ == "__main__":
    B = 2          # batch
    N = 16         # tokens per view (patch_size view and patch_num view)
    L_SEQ = 16     # original sequence length
    D = 32         # d_model
    H = 4          # heads
    DH = D // H    # head dim
    NUM_LAYERS = 2

    root = jax.random.PRNGKey(0)
    k_in, k_par = jax.random.split(root)
    k_ps, k_pn, k_ori = jax.random.split(k_in, 3)

    x_patch_size = jax.random.normal(k_ps, (B, N, D), jnp.float32)
    x_patch_num = jax.random.normal(k_pn, (B, N, D), jnp.float32)
    x_ori = jax.random.normal(k_ori, (B, L_SEQ, D), jnp.float32)
    patch_index = 0

    layer_keys = jax.random.split(k_par, NUM_LAYERS)
    layer_params = [init_layer_params(k, D, H, DH) for k in layer_keys]

    series_list, prior_list = encoder_forward(
        layer_params, x_patch_size, x_patch_num, x_ori, patch_index,
        attn_mask=None)

    series_list = [jax.block_until_ready(s) for s in series_list]
    prior_list = [jax.block_until_ready(p) for p in prior_list]

    # sanity checks: shapes, rows ~sum to 1, agreement with f32 reference
    # (loose tolerances: bf16 MXU operands + approx reciprocal).
    for l in range(NUM_LAYERS):
        s, p = series_list[l], prior_list[l]
        assert s.shape == (B, H, N, N) and p.shape == (B, H, N, N)
        assert jnp.allclose(jnp.sum(s, axis=-1), 1.0, atol=1e-2)
        assert jnp.allclose(jnp.sum(p, axis=-1), 1.0, atol=1e-2)
        ref_s = _reference_attention(
            x_patch_num, layer_params[l]["wq_num"], layer_params[l]["wk_num"])
        ref_p = _reference_attention(
            x_patch_size, layer_params[l]["wq_size"], layer_params[l]["wk_size"])
        assert jnp.max(jnp.abs(s - ref_s)) < 2e-2
        assert jnp.max(jnp.abs(p - ref_p)) < 2e-2

    print("KERNEL_OK")
</pallas_src>

<mosaic_0001>
module attributes {stable_mosaic.version = 11 : i64} {
  func.func @_encoder_attn_kernel(%arg0: i32, %arg1: memref<1x2x16x32xbf16, #tpu.memory_space<vmem>>, %arg2: memref<1x32x128xbf16, #tpu.memory_space<vmem>>, %arg3: memref<1x2x8x256xf32, #tpu.memory_space<vmem>>) attributes {dimension_semantics = [#tpu.dimension_semantics<parallel>], iteration_bounds = array<i64: 2>, scalar_prefetch = 0 : i64, scratch_operands = 0 : i64, tpu.core_type = #tpu.core_type<tc>, window_params = [{transform_indices = @transform_0, window_bounds = array<i64: 1, 2, 16, 32>}, {transform_indices = @transform_1, window_bounds = array<i64: 1, 32, 128>}, {transform_indices = @transform_2, window_bounds = array<i64: 1, 2, 8, 256>}]} {
    %c0 = arith.constant 0 : index
    %c0_0 = arith.constant 0 : index
    %c0_1 = arith.constant 0 : index
    %c0_2 = arith.constant 0 : index
    %0 = vector.load %arg1[%c0, %c0_0, %c0_1, %c0_2] : memref<1x2x16x32xbf16, #tpu.memory_space<vmem>>, vector<1x2x16x32xbf16>
    %1 = vector.shape_cast %0 : vector<1x2x16x32xbf16> to vector<2x16x32xbf16>
    %2 = vector.shape_cast %1 : vector<2x16x32xbf16> to vector<32x32xbf16>
    %c0_3 = arith.constant 0 : index
    %c0_4 = arith.constant 0 : index
    %c0_5 = arith.constant 0 : index
    %3 = vector.load %arg2[%c0_3, %c0_4, %c0_5] : memref<1x32x128xbf16, #tpu.memory_space<vmem>>, vector<1x32x128xbf16>
    %4 = vector.shape_cast %3 : vector<1x32x128xbf16> to vector<32x128xbf16>
    %cst = arith.constant dense<0.000000e+00> : vector<32x128xf32>
    %5 = tpu.matmul %2, %4, %cst {dimension_numbers = #tpu.dot_dimension_numbers<[1], [0], [0], [1], [0, 0, 1, 1], [], []>} : vector<32x32xbf16>, vector<32x128xbf16>, vector<32x128xf32> -> vector<32x128xf32>
    %6 = vector.extract_strided_slice %5 {offsets = [0, 0], sizes = [32, 8], strides = [1, 1]} : vector<32x128xf32> to vector<32x8xf32>
    %7 = vector.shape_cast %6 : vector<32x8xf32> to vector<2x16x8xf32>
    %8 = arith.truncf %7 : vector<2x16x8xf32> to vector<2x16x8xbf16>
    %9 = vector.extract_strided_slice %5 {offsets = [0, 32], sizes = [32, 8], strides = [1, 1]} : vector<32x128xf32> to vector<32x8xf32>
    %10 = vector.shape_cast %9 : vector<32x8xf32> to vector<2x16x8xf32>
    %11 = arith.truncf %10 : vector<2x16x8xf32> to vector<2x16x8xbf16>
    "tpu.trace_start"() <{level = 10 : i32, message = "bnd,bmd->bnm"}> : () -> ()
    %cst_6 = arith.constant dense<0.000000e+00> : vector<2x16x16xf32>
    %12 = tpu.matmul %8, %11, %cst_6 {dimension_numbers = #tpu.dot_dimension_numbers<[2], [2], [1], [1], [0, 0, 0, 1, 1, 1], [0], [0]>} : vector<2x16x8xbf16>, vector<2x16x8xbf16>, vector<2x16x16xf32> -> vector<2x16x16xf32>
    "tpu.trace_stop"() : () -> ()
    %13 = vector.extract_strided_slice %5 {offsets = [0, 8], sizes = [32, 8], strides = [1, 1]} : vector<32x128xf32> to vector<32x8xf32>
    %14 = vector.shape_cast %13 : vector<32x8xf32> to vector<2x16x8xf32>
    %15 = arith.truncf %14 : vector<2x16x8xf32> to vector<2x16x8xbf16>
    %16 = vector.extract_strided_slice %5 {offsets = [0, 40], sizes = [32, 8], strides = [1, 1]} : vector<32x128xf32> to vector<32x8xf32>
    %17 = vector.shape_cast %16 : vector<32x8xf32> to vector<2x16x8xf32>
    %18 = arith.truncf %17 : vector<2x16x8xf32> to vector<2x16x8xbf16>
    "tpu.trace_start"() <{level = 10 : i32, message = "bnd,bmd->bnm"}> : () -> ()
    %cst_7 = arith.constant dense<0.000000e+00> : vector<2x16x16xf32>
    %19 = tpu.matmul %15, %18, %cst_7 {dimension_numbers = #tpu.dot_dimension_numbers<[2], [2], [1], [1], [0, 0, 0, 1, 1, 1], [0], [0]>} : vector<2x16x8xbf16>, vector<2x16x8xbf16>, vector<2x16x16xf32> -> vector<2x16x16xf32>
    "tpu.trace_stop"() : () -> ()
    %20 = vector.extract_strided_slice %5 {offsets = [0, 16], sizes = [32, 8], strides = [1, 1]} : vector<32x128xf32> to vector<32x8xf32>
    %21 = vector.shape_cast %20 : vector<32x8xf32> to vector<2x16x8xf32>
    %22 = arith.truncf %21 : vector<2x16x8xf32> to vector<2x16x8xbf16>
    %23 = vector.extract_strided_slice %5 {offsets = [0, 48], sizes = [32, 8], strides = [1, 1]} : vector<32x128xf32> to vector<32x8xf32>
    %24 = vector.shape_cast %23 : vector<32x8xf32> to vector<2x16x8xf32>
    %25 = arith.truncf %24 : vector<2x16x8xf32> to vector<2x16x8xbf16>
    "tpu.trace_start"() <{level = 10 : i32, message = "bnd,bmd->bnm"}> : () -> ()
    %cst_8 = arith.constant dense<0.000000e+00> : vector<2x16x16xf32>
    %26 = tpu.matmul %22, %25, %cst_8 {dimension_numbers = #tpu.dot_dimension_numbers<[2], [2], [1], [1], [0, 0, 0, 1, 1, 1], [0], [0]>} : vector<2x16x8xbf16>, vector<2x16x8xbf16>, vector<2x16x16xf32> -> vector<2x16x16xf32>
    "tpu.trace_stop"() : () -> ()
    %27 = vector.extract_strided_slice %5 {offsets = [0, 24], sizes = [32, 8], strides = [1, 1]} : vector<32x128xf32> to vector<32x8xf32>
    %28 = vector.shape_cast %27 : vector<32x8xf32> to vector<2x16x8xf32>
    %29 = arith.truncf %28 : vector<2x16x8xf32> to vector<2x16x8xbf16>
    %30 = vector.extract_strided_slice %5 {offsets = [0, 56], sizes = [32, 8], strides = [1, 1]} : vector<32x128xf32> to vector<32x8xf32>
    %31 = vector.shape_cast %30 : vector<32x8xf32> to vector<2x16x8xf32>
    %32 = arith.truncf %31 : vector<2x16x8xf32> to vector<2x16x8xbf16>
    "tpu.trace_start"() <{level = 10 : i32, message = "bnd,bmd->bnm"}> : () -> ()
    %cst_9 = arith.constant dense<0.000000e+00> : vector<2x16x16xf32>
    %33 = tpu.matmul %29, %32, %cst_9 {dimension_numbers = #tpu.dot_dimension_numbers<[2], [2], [1], [1], [0, 0, 0, 1, 1, 1], [0], [0]>} : vector<2x16x8xbf16>, vector<2x16x8xbf16>, vector<2x16x16xf32> -> vector<2x16x16xf32>
    "tpu.trace_stop"() : () -> ()
    %34 = vector.extract_strided_slice %5 {offsets = [0, 64], sizes = [32, 8], strides = [1, 1]} : vector<32x128xf32> to vector<32x8xf32>
    %35 = vector.shape_cast %34 : vector<32x8xf32> to vector<2x16x8xf32>
    %36 = arith.truncf %35 : vector<2x16x8xf32> to vector<2x16x8xbf16>
    %37 = vector.extract_strided_slice %5 {offsets = [0, 96], sizes = [32, 8], strides = [1, 1]} : vector<32x128xf32> to vector<32x8xf32>
    %38 = vector.shape_cast %37 : vector<32x8xf32> to vector<2x16x8xf32>
    %39 = arith.truncf %38 : vector<2x16x8xf32> to vector<2x16x8xbf16>
    "tpu.trace_start"() <{level = 10 : i32, message = "bnd,bmd->bnm"}> : () -> ()
    %cst_10 = arith.constant dense<0.000000e+00> : vector<2x16x16xf32>
    %40 = tpu.matmul %36, %39, %cst_10 {dimension_numbers = #tpu.dot_dimension_numbers<[2], [2], [1], [1], [0, 0, 0, 1, 1, 1], [0], [0]>} : vector<2x16x8xbf16>, vector<2x16x8xbf16>, vector<2x16x16xf32> -> vector<2x16x16xf32>
    "tpu.trace_stop"() : () -> ()
    %41 = vector.extract_strided_slice %5 {offsets = [0, 72], sizes = [32, 8], strides = [1, 1]} : vector<32x128xf32> to vector<32x8xf32>
    %42 = vector.shape_cast %41 : vector<32x8xf32> to vector<2x16x8xf32>
    %43 = arith.truncf %42 : vector<2x16x8xf32> to vector<2x16x8xbf16>
    %44 = vector.extract_strided_slice %5 {offsets = [0, 104], sizes = [32, 8], strides = [1, 1]} : vector<32x128xf32> to vector<32x8xf32>
    %45 = vector.shape_cast %44 : vector<32x8xf32> to vector<2x16x8xf32>
    %46 = arith.truncf %45 : vector<2x16x8xf32> to vector<2x16x8xbf16>
    "tpu.trace_start"() <{level = 10 : i32, message = "bnd,bmd->bnm"}> : () -> ()
    %cst_11 = arith.constant dense<0.000000e+00> : vector<2x16x16xf32>
    %47 = tpu.matmul %43, %46, %cst_11 {dimension_numbers = #tpu.dot_dimension_numbers<[2], [2], [1], [1], [0, 0, 0, 1, 1, 1], [0], [0]>} : vector<2x16x8xbf16>, vector<2x16x8xbf16>, vector<2x16x16xf32> -> vector<2x16x16xf32>
    "tpu.trace_stop"() : () -> ()
    %48 = vector.extract_strided_slice %5 {offsets = [0, 80], sizes = [32, 8], strides = [1, 1]} : vector<32x128xf32> to vector<32x8xf32>
    %49 = vector.shape_cast %48 : vector<32x8xf32> to vector<2x16x8xf32>
    %50 = arith.truncf %49 : vector<2x16x8xf32> to vector<2x16x8xbf16>
    %51 = vector.extract_strided_slice %5 {offsets = [0, 112], sizes = [32, 8], strides = [1, 1]} : vector<32x128xf32> to vector<32x8xf32>
    %52 = vector.shape_cast %51 : vector<32x8xf32> to vector<2x16x8xf32>
    %53 = arith.truncf %52 : vector<2x16x8xf32> to vector<2x16x8xbf16>
    "tpu.trace_start"() <{level = 10 : i32, message = "bnd,bmd->bnm"}> : () -> ()
    %cst_12 = arith.constant dense<0.000000e+00> : vector<2x16x16xf32>
    %54 = tpu.matmul %50, %53, %cst_12 {dimension_numbers = #tpu.dot_dimension_numbers<[2], [2], [1], [1], [0, 0, 0, 1, 1, 1], [0], [0]>} : vector<2x16x8xbf16>, vector<2x16x8xbf16>, vector<2x16x16xf32> -> vector<2x16x16xf32>
    "tpu.trace_stop"() : () -> ()
    %55 = vector.extract_strided_slice %5 {offsets = [0, 88], sizes = [32, 8], strides = [1, 1]} : vector<32x128xf32> to vector<32x8xf32>
    %56 = vector.shape_cast %55 : vector<32x8xf32> to vector<2x16x8xf32>
    %57 = arith.truncf %56 : vector<2x16x8xf32> to vector<2x16x8xbf16>
    %58 = vector.extract_strided_slice %5 {offsets = [0, 120], sizes = [32, 8], strides = [1, 1]} : vector<32x128xf32> to vector<32x8xf32>
    %59 = vector.shape_cast %58 : vector<32x8xf32> to vector<2x16x8xf32>
    %60 = arith.truncf %59 : vector<2x16x8xf32> to vector<2x16x8xbf16>
    "tpu.trace_start"() <{level = 10 : i32, message = "bnd,bmd->bnm"}> : () -> ()
    %cst_13 = arith.constant dense<0.000000e+00> : vector<2x16x16xf32>
    %61 = tpu.matmul %57, %60, %cst_13 {dimension_numbers = #tpu.dot_dimension_numbers<[2], [2], [1], [1], [0, 0, 0, 1, 1, 1], [0], [0]>} : vector<2x16x8xbf16>, vector<2x16x8xbf16>, vector<2x16x16xf32> -> vector<2x16x16xf32>
    "tpu.trace_stop"() : () -> ()
    %62 = vector.shape_cast %12 : vector<2x16x16xf32> to vector<2x1x16x16xf32>
    %63 = vector.shape_cast %19 : vector<2x16x16xf32> to vector<2x1x16x16xf32>
    %64 = vector.shape_cast %26 : vector<2x16x16xf32> to vector<2x1x16x16xf32>
    %65 = vector.shape_cast %33 : vector<2x16x16xf32> to vector<2x1x16x16xf32>
    %66 = vector.shape_cast %40 : vector<2x16x16xf32> to vector<2x1x16x16xf32>
    %67 = vector.shape_cast %47 : vector<2x16x16xf32> to vector<2x1x16x16xf32>
    %68 = vector.shape_cast %54 : vector<2x16x16xf32> to vector<2x1x16x16xf32>
    %69 = vector.shape_cast %61 : vector<2x16x16xf32> to vector<2x1x16x16xf32>
    %70 = tpu.concatenate %62, %63, %64, %65, %66, %67, %68, %69 in 1 : vector<2x1x16x16xf32>, vector<2x1x16x16xf32>, vector<2x1x16x16xf32>, vector<2x1x16x16xf32>, vector<2x1x16x16xf32>, vector<2x1x16x16xf32>, vector<2x1x16x16xf32>, vector<2x1x16x16xf32> -> vector<2x8x16x16xf32>
    %cst_14 = arith.constant 0.353553385 : f32
    %71 = vector.broadcast %cst_14 : f32 to vector<2x8x16x16xf32>
    %72 = arith.mulf %70, %71 : vector<2x8x16x16xf32>
    %cst_15 = arith.constant dense<0xFF800000> : vector<2x8x16xf32>
    %73 = vector.multi_reduction <maximumf>, %72, %cst_15 [3] : vector<2x8x16x16xf32> to vector<2x8x16xf32>
    %74 = vector.shape_cast %73 : vector<2x8x16xf32> to vector<2x8x16x1xf32>
    %75 = vector.broadcast %74 : vector<2x8x16x1xf32> to vector<2x8x16x16xf32>
    %76 = arith.subf %72, %75 : vector<2x8x16x16xf32>
    %77 = math.exp %76 : vector<2x8x16x16xf32>
    %cst_16 = arith.constant dense<0.000000e+00> : vector<2x8x16xf32>
    %78 = vector.multi_reduction <add>, %77, %cst_16 [3] : vector<2x8x16x16xf32> to vector<2x8x16xf32>
    %79 = vector.shape_cast %78 : vector<2x8x16xf32> to vector<2x8x16x1xf32>
    %80 = tpu.reciprocal %79 {approx = true} : vector<2x8x16x1xf32> -> vector<2x8x16x1xf32>
    %81 = vector.broadcast %80 : vector<2x8x16x1xf32> to vector<2x8x16x16xf32>
    %82 = arith.mulf %77, %81 : vector<2x8x16x16xf32>
    %83 = vector.shape_cast %82 : vector<2x8x16x16xf32> to vector<2x8x256xf32>
    %c0_17 = arith.constant 0 : index
    %c0_18 = arith.constant 0 : index
    %c0_19 = arith.constant 0 : index
    %c0_20 = arith.constant 0 : index
    %84 = vector.load %arg3[%c0_17, %c0_18, %c0_19, %c0_20] : memref<1x2x8x256xf32, #tpu.memory_space<vmem>>, vector<1x2x8x256xf32>
    %85 = vector.shape_cast %84 : vector<1x2x8x256xf32> to vector<2x8x256xf32>
    %86 = vector.shape_cast %83 : vector<2x8x256xf32> to vector<1x2x8x256xf32>
    tpu.vector_store %arg3[%c0_17, %c0_18, %c0_19, %c0_20], %86 {strides = array<i32>} : memref<1x2x8x256xf32, #tpu.memory_space<vmem>>, vector<1x2x8x256xf32>,
    return
  }
  func.func @transform_0(%arg0: i32) -> (i32, i32, i32, i32) {
    %c0_i32 = arith.constant 0 : i32
    %c0_i32_0 = arith.constant 0 : i32
    %c0_i32_1 = arith.constant 0 : i32
    %c0_i32_2 = arith.constant 0 : i32
    return %arg0, %c0_i32, %c0_i32_0, %c0_i32_1 : i32, i32, i32, i32
  }
  func.func @transform_1(%arg0: i32) -> (i32, i32, i32) {
    %c0_i32 = arith.constant 0 : i32
    %c0_i32_0 = arith.constant 0 : i32
    %c0_i32_1 = arith.constant 0 : i32
    return %arg0, %c0_i32, %c0_i32_0 : i32, i32, i32
  }
  func.func @transform_2(%arg0: i32) -> (i32, i32, i32, i32) {
    %c0_i32 = arith.constant 0 : i32
    %c0_i32_0 = arith.constant 0 : i32
    %c0_i32_1 = arith.constant 0 : i32
    %c0_i32_2 = arith.constant 0 : i32
    return %arg0, %c0_i32, %c0_i32_0, %c0_i32_1 : i32, i32, i32, i32
  }
}

</mosaic_0001>

<bundles_post_ra>
// kernel: tpu_custom_call.1
= control target key start
LH: loop header
LB: loop body
LE: loop exit
PB: predicated region body
PF: predicated region fallthrough
CT: control target
= control target key end

     0   :  { %7 = vsyncpa [#allocation3], 0  ;;  %s3838_s0 = inlined_call_operand.hbm [shape: bf16[2,2,16,32], index: 0, kind: input, shape index: {}]   ;;  %s3839_s1 = inlined_call_operand.hbm [shape: bf16[2,32,128], index: 1, kind: input, shape index: {}]   ;;  %s3840_s2 = inlined_call_operand.hbm [shape: f32[2,2,8,256], index: 2, kind: output, shape index: {}]  }
   0x1   :  { %9 = vsyncpa [#allocation3 + $0x1], 0 }
   0x2   :  { %10 = vsyncpa [#allocation6], 0 }
   0x3   :  { %12 = vsyncpa [#allocation6 + $0x1], 0 }
   0x4   :  { %13 = vsyncpa [#allocation4], 0 }
   0x5   :  { %15 = vsyncpa [#allocation4 + $0x1], 0  ;;  %s2848_s9 = smov 0   ;;  %s2850_s10 = smov 0  }
   0x6   :  { %s2852_s11 = smov 0   ;;  %s2854_s12 = smov 0  }
   0x7 LB: > { %s2869_s13 = sadd.s32 4294967295, %s2806_s12   ;;  %s2294_s14 = sadd.s32 4294967294, %s2806_s12   ;;  %s2806_s12 = sphi %s2854_s12, %s3856_s12   ;;  %s2802_s11 = sphi %s2852_s11, %s3855_s11   ;;  %s2798_s10 = sphi %s2850_s10, %s3854_s10   ;;  %s2794_s9 = sphi %s2848_s9, %s3853_s9  }
   0x8   : > { %s2873_s15 = sadd.s32 1, %s2806_s12   ;;  %s28_s16 = sadd.s32 1, %s2802_s11 }
   0x9   : > { %s25_s17 = ssub.s32 %s2806_s12, %s2873_s15  ;;  %p35_p0 = scmp.ne.s32.totalorder %s2802_s11, %s2798_s10 }
   0xa   : > { %p26_p1 = scmp.eq.s32.totalorder %s25_s17, 0  ;;  %p36_p2 = scmp.eq.s32.totalorder %s2806_s12, 0 }
   0xb   : > { %p41_p3 = scmp.ne.s32.totalorder %s2798_s10, %s2794_s9  ;;  %p42_p4 = scmp.eq.s32.totalorder %s2869_s13, 0 }
   0xc   : > { %s2885_s18 = scalar_select %p26_p1, %s2802_s11, %s28_s16  }
   0xd   : > { %p2887_p5 = por %p36_p2, %p35_p0  ;;  %p2891_p6 = por %p42_p4, %p41_p3 }
   0xe   : > { %p91_p7 = scmp.eq.s32.totalorder %s2869_s13, 1  ;;  %p97_p8 = scmp.eq.s32.totalorder %s2294_s14, 1 }
   0xf   : > { %s3844_s20 = scalar_select %p2891_p6, 1, 0 }
  0x10   : > { %p2494_p10 = scmp.lt.s32.totalorder %s2806_s12, 2  ;;  %p2898_p11 = por %p91_p7, %p35_p0 }
  0x11   : > { %p2902_p12 = por %p97_p8, %p41_p3  ;;  %s2907_s23 = sand.u32 1, %s2802_s11  }
  0x12   : > { %s3845_s21 = scalar_select %p2898_p11, 1, 0 }
  0x13   : > { %s3846_s22 = scalar_select %p2902_p12, 1, 0 }
  0x14   : > { %s2334_s24 = sshll.u32 %s2806_s12, 8  ;;  %s2297_s25 = sshll.u32 %s2907_s23, 4 }
  0x15   : > { %s2916_s28 = scalar_lea.hbm %s3838_s0, %s2334_s24  ;;  %s121_s29 = scalar_lea.vmem [#allocation2], %s2297_s25 }
  0x16   : > { %s128_s30 = sshll.u32 %s121_s29, 4  ;;  %p2922_p13 = pnand %p2494_p10, %p2887_p5  ;;  %s2926_s30 = int_to_ptr.vmem [resolvable:$true] %s128_s30 }
  0x17   : > { %s118_s4 = scalar_lea.sflag [#allocation3], %s2907_s23  ;;  %s2682_s5 = scalar_lea.hbm %s2916_s28, 256 }
  0x18   : > { %p2683_p0 = scmp.ne.s32.totalorder %s2916_s28, %s2682_s5  ;;  %p2684_p1 = pneg %p2922_p13 }
  0x19   : > { %s2687_s8 = scalar_lea.hbm %s3838_s0, 512  ;;  %p2688_p4 = scmp.lt.s32.totalorder %s2916_s28, %s3838_s0 }
  0x1a   : > { %p2685_p2 = pnand %p2684_p1, %p2683_p0  ;;  %p2689_p5 = scmp.lt.s32.totalorder %s2687_s8, %s2682_s5 }
  0x1c   : > { %p2686_p3 = pneg %p2685_p2  ;;  %p2690_p7 = por %p2689_p5, %p2688_p4 }
  0x1e   : > { %p2691_p8 = pnand %p2690_p7, %p2686_p3 }
  0x20   : > { %2694 = shalt.err (!%p2691_p8)
}
  0x21   : > { %s2695_s17 = scalar_lea.vmem %s2926_s30, 256  ;;  %s2808_s19 = smov [#allocation2]  }
  0x22   : > { %p2696_p10 = scmp.ne.s32.totalorder %s2926_s30, %s2695_s17  ;;  %s2700_s26 = sshll.u32 %s2808_s19, 4  ;;  %s2701_s26 = int_to_ptr.vmem [resolvable:$false] %s2700_s26 }
  0x23   : > { %s2702_s27 = scalar_lea.vmem %s2701_s26, 512  ;;  %p2703_p9 = scmp.lt.s32.totalorder %s2926_s30, %s2701_s26 }
  0x24   : > { %p2698_p0 = pnand %p2696_p10, %p2684_p1  ;;  %p2704_p12 = scmp.lt.s32.totalorder %s2702_s27, %s2695_s17 }
  0x26   : > { %p2699_p2 = pneg %p2698_p0  ;;  %p2705_p11 = por %p2704_p12, %p2703_p9 }
  0x28   : > { %p2706_p4 = pnand %p2705_p11, %p2699_p2 }
  0x2a   : > { %2709 = shalt.err (!%p2706_p4)
}
  0x2b   : > { %s2809_s29 = smov 64   ;;  %s2810_s5 = smov 4  }
  0x2c   : > { %2486 = dma.hbm_to_vmem [thread:$0]  (!%p2922_p13), %s2916_s28, 256, %s2926_s30, %s118_s4, %s2809_s29, %s2809_s29, %s2810_s5  }
  0x2d   : > { %p2303_p9 = scmp.ge.s32.totalorder %s2806_s12, 1  ;;  %p157_p11 = scmp.lt.s32.totalorder %s2806_s12, 3 }
  0x2e   : > { %s2969_s14 = scalar_lea.hbm %s3839_s1, %s2334_s24  ;;  %s142_s16 = scalar_lea.vmem [#allocation5], %s2297_s25 }
  0x2f   : > { %p2960_p12 = pnand %p2303_p9, %p157_p11  ;;  %s149_s17 = sshll.u32 %s142_s16, 4  ;;  %s2973_s17 = int_to_ptr.vmem [resolvable:$true] %s149_s17 }
  0x30   : > { %s139_s28 = scalar_lea.sflag [#allocation6], %s2907_s23  ;;  %s2710_s30 = scalar_lea.hbm %s2969_s14, 256 }
  0x31   : > { %p2711_p3 = scmp.ne.s32.totalorder %s2969_s14, %s2710_s30  ;;  %s2715_s24 = scalar_lea.hbm %s3839_s1, 512 }
  0x32   : > { %p2716_p8 = scmp.lt.s32.totalorder %s2969_s14, %s3839_s1  ;;  %p2717_p10 = scmp.lt.s32.totalorder %s2715_s24, %s2710_s30 }
  0x33   : > { %p2713_p5 = pnand %p2711_p3, %p2684_p1 }
  0x34   : > { %p2718_p0 = por %p2717_p10, %p2716_p8 }
  0x35   : > { %p2714_p7 = pneg %p2713_p5 }
  0x37   : > { %p2719_p2 = pnand %p2718_p0, %p2714_p7 }
  0x39   : > { %2722 = shalt.err (!%p2719_p2)
}
  0x3a   : > { %s2723_s23 = scalar_lea.vmem %s2973_s17, 256  ;;  %s2811_s25 = smov [#allocation5]  }
  0x3b   : > { %p2724_p4 = scmp.ne.s32.totalorder %s2973_s17, %s2723_s23  ;;  %s2728_s7 = sshll.u32 %s2811_s25, 4  ;;  %s2729_s7 = int_to_ptr.vmem [resolvable:$false] %s2728_s7 }
  0x3c   : > { %s2730_s8 = scalar_lea.vmem %s2729_s7, 512  ;;  %p2731_p3 = scmp.lt.s32.totalorder %s2973_s17, %s2729_s7 }
  0x3d   : > { %p2726_p9 = pnand %p2724_p4, %p2684_p1  ;;  %p2732_p5 = scmp.lt.s32.totalorder %s2730_s8, %s2723_s23 }
  0x3f   : > { %p2727_p11 = pneg %p2726_p9  ;;  %p2733_p6 = por %p2732_p5, %p2731_p3 }
  0x41   : > { %p2734_p8 = pnand %p2733_p6, %p2727_p11 }
  0x43   : > { %2737 = shalt.err (!%p2734_p8)
}
  0x44   : > { %2489 = dma.hbm_to_vmem [thread:$0]  (!%p2922_p13), %s2969_s14, 256, %s2973_s17, %s139_s28, %s2809_s29, %s2809_s29, %s2810_s5  }
  0x45   : > { %161 = sbr.rel (%p2960_p12) target bundleno = 1177 (0x499), region = 28  ;;  %s3004_s16 = sand.u32 (!%p2960_p12), 1, %s2798_s10  }
  0x46   : > { %s2304_s30 = sshll.u32 (!%p2960_p12), %s3004_s16, 4  ;;  %s164_s4 = scalar_lea.sflag (!%p2960_p12), [#allocation3], %s3004_s16 }
  0x47   : > { %s167_s19 = scalar_lea.vmem (!%p2960_p12), [#allocation2], %s2304_s30  ;;  %p3849_p6 = scmp.ne.s32.totalorder (!%p2960_p12), %s3844_s20, 0 }
  0x4a   : > { %2781 = dma.done.wait (%p3849_p6), %s164_s4, 256  }
  0x4b   : > { %2783 = vsyncadd (%p3849_p6), %s164_s4, 4294967040  ;;  %s173_s3 = scalar_lea.sflag [#allocation6], %s3004_s16  ;;  %s176_s29 = scalar_lea.vmem [#allocation5], %s2304_s30 }
  0x4c   : > { %2785 = dma.done.wait (%p3849_p6), %s173_s3, 256  }
  0x4d   : > { %2787 = vsyncadd (%p3849_p6), %s173_s3, 4294967040  ;;  %v2550_v0 = vld [vmem:[%s176_s29 + $0x8] sm:$0xff]   ;;  %v2551_v1 = vld [vmem:[%s176_s29] sm:$0xff]   ;;  %vm233_vm0 = vcmask 261120   ;;  %v2812_v4 = vmov 0.0   ;;  %vm2813_vm1 = vmmov 0  }
  0x4e   : > { %2373 = vmatprep.subr.bf16.mxu0 %v2550_v0  ;;  %v2552_v2 = vld [vmem:[%s167_s19] sm:$0xff]   ;;  %v2553_v3 = vld [vmem:[%s167_s19 + $0x8] sm:$0xff]   ;;  %2381 = vmatprep.subr.bf16.mxu1 %v2812_v4  ;;  %s2814_s20 = smov 88   ;;  %s2815_s5 = smov 96   ;;  %vm294_vm2 = vcmask 64512   ;;  %vm1138_vm3 = vcmask 130048  }
  0x4f   : > { %2374 = vmatpush3.bf16.msra.mxu0 %v2550_v0  ;;  %2377 = vmatprep.mubr.msk.bf16.mxu0 %vm233_vm0, %v2552_v2  ;;  %s2816_s6 = smov 120   ;;  %s2817_s14 = smov 80   ;;  %vm2151_vm4 = vcmask 392192   ;;  %vm2154_vm5 = vcmask 523264   ;;  %vm2157_vm6 = vcmask 654336   ;;  %vm2163_vm7 = vcmask 916480  }
  0x50   : > { %2375 = vmatprep.subr.bf16.mxu0 %v2551_v1  ;;  %2383 = vmatprep.mubr.msk.bf16.mxu1 %vm2813_vm1, %v2812_v4  ;;  %s2818_s17 = smov 112   ;;  %s2819_s28 = smov 72   ;;  %vm2160_vm8 = vcmask 785408  }
  0x51   : > { %s2820_s24 = smov 104   ;;  %s2821_s26 = smov 32  }
  0x52   : > { %s2822_s27 = smov 64   ;;  %s2823_s23 = smov 24  }
  0x53   : > { %2376 = vmatpush3.bf16.msra.mxu0 %v2551_v1  ;;  %s2824_s25 = smov 56   ;;  %s2825_s7 = smov 16  }
  0x54   : > { %2387 = vmatprep.subr.bf16.mxu0 %v2812_v4  ;;  %s2826_s8 = smov 48   ;;  %s2827_s30 = smov 8  }
  0x55   : > { %s2828_s4 = smov 40   ;;  %s2306_s19 = sshll.u32 %s3004_s16, 5 }
  0x56   : > { %2378 = vmatmul.mubr.msk.bf16.vlgmr.msra.gmra.mxu0 %vm233_vm0, %v2553_v3  ;;  %s3751_s3 = scalar_lea.vmem [#allocation7], %s2306_s19  ;;  %p3850_p1 = scmp.ne.s32.totalorder %s3845_s21, 0 }
  0x57   : > { %2389 = vmatprep.mubr.msk.bf16.mxu0 %vm2813_vm1, %v2812_v4  ;;  %s2198_s29 = sshll.u32 %s3751_s3, 4  ;;  %s3783_s29 = int_to_ptr.vmem [resolvable:$true] %s2198_s29 }
 0x116   : > { %v2379_v5 = vpop.f32.mrf.mxu0 }
 0x118   : > { %v274_v6 = vpop.f32.mrf.mxu0 }
 0x11a   : > { %v2380_v7 = vpop.f32.mrf.mxu0 }
 0x11b   : > { %v3025_v8 = vpack.c.bf16 %v2380_v7, %v2379_v5 }
 0x11c   : > { %v277_v9 = vpop.f32.mrf.mxu0 }
 0x11d   : > { %v289_v10 = vpack.c.bf16 %v277_v9, %v274_v6  ;;  %445 = vrot.lane.b32.xlu1 %v3025_v8, %s2814_s20 }
 0x11f   : > { %292 = vrot.lane.b32.xlu0 %v289_v10, %s2815_s5 }
 0x121   : > { %394 = vrot.lane.b32.xlu1 %v289_v10, %s2814_s20  ;;  %s2336_s20 = sshll.u32 %s2869_s13, 9 }
 0x123   : > { %343 = vrot.lane.b32.xlu0 %v3025_v8, %s2815_s5 }
 0x125   : > { %443 = vrot.lane.b32.xlu1 %v3025_v8, %s2816_s6 }
 0x127   : > { %392 = vrot.lane.b32.xlu0 %v289_v10, %s2816_s6  ;;  %s3792_s6 = scalar_lea.hbm %s3840_s2, %s2336_s20 }
 0x129   : > { %547 = vrot.lane.b32.xlu1 %v3025_v8, %s2817_s14 }
 0x12b   : > { %496 = vrot.lane.b32.xlu0 %v289_v10, %s2817_s14 }
 0x12d   : > { %545 = vrot.lane.b32.xlu1 %v3025_v8, %s2818_s17 }
 0x12f   : > { %494 = vrot.lane.b32.xlu0 %v289_v10, %s2818_s17 }
 0x131   : > { %649 = vrot.lane.b32.xlu1 %v3025_v8, %s2819_s28 }
 0x133   : > { %598 = vrot.lane.b32.xlu0 %v289_v10, %s2819_s28  ;;  %s2831_s28 = smov [#allocation7]  }
 0x135   : > { %647 = vrot.lane.b32.xlu1 %v3025_v8, %s2820_s24 }
 0x137   : > { %596 = vrot.lane.b32.xlu0 %v289_v10, %s2820_s24  ;;  %s2742_s24 = sshll.u32 %s2831_s28, 4  ;;  %s2743_s24 = int_to_ptr.vmem [resolvable:$false] %s2742_s24 }
 0x138   : > { %p2745_p10 = scmp.lt.s32.totalorder %s3783_s29, %s2743_s24 }
 0x139   : > { %751 = vrot.lane.b32.xlu1 %v3025_v8, %s2821_s26 }
 0x13b   : > { %700 = vrot.lane.b32.xlu0 %v289_v10, %s2821_s26 }
 0x13d   : > { %749 = vrot.lane.b32.xlu1 %v3025_v8, %s2822_s27 }
 0x13f   : > { %698 = vrot.lane.b32.xlu0 %v289_v10, %s2822_s27 }
 0x141   : > { %853 = vrot.lane.b32.xlu1 %v3025_v8, %s2823_s23 }
 0x143   : > { %802 = vrot.lane.b32.xlu0 %v289_v10, %s2823_s23 }
 0x145   : > { %851 = vrot.lane.b32.xlu1 %v3025_v8, %s2824_s25 }
 0x147   : > { %800 = vrot.lane.b32.xlu0 %v289_v10, %s2824_s25 }
 0x149   : > { %955 = vrot.lane.b32.xlu1 %v3025_v8, %s2825_s7 }
 0x14b   : > { %904 = vrot.lane.b32.xlu0 %v289_v10, %s2825_s7 }
 0x14d   : > { %953 = vrot.lane.b32.xlu1 %v3025_v8, %s2826_s8 }
 0x14f   : > { %902 = vrot.lane.b32.xlu0 %v289_v10, %s2826_s8 }
 0x151   : > { %1057 = vrot.lane.b32.xlu1 %v3025_v8, %s2827_s30 }
 0x153   : > { %1006 = vrot.lane.b32.xlu0 %v289_v10, %s2827_s30 }
 0x155   : > { %1055 = vrot.lane.b32.xlu1 %v3025_v8, %s2828_s4 }
 0x157   : > { %1004 = vrot.lane.b32.xlu0 %v289_v10, %s2828_s4 }
 0x18f   : > { %v446_v11 = vpop.permute.xlu1 %445 }
 0x190   : > { %v451_v22 = vsel %vm294_vm2, %v446_v11, 0 }
 0x191   : > { %v293_v12 = vpop.permute.xlu0 %292 }
 0x192   : > { %v299_v13 = vsel %vm294_vm2, %v293_v12, 0 }
 0x193   : > { %v395_v14 = vpop.permute.xlu1 %394  ;;  %2382 = vmatpush3.bf16.xpose.msra.mxu1 %v299_v13 }
 0x194   : > { %2393 = vmatprep.subr.bf16.mxu1 %v2812_v4  ;;  %v400_v19 = vsel %vm294_vm2, %v395_v14, 0 }
 0x195   : > { %v344_v15 = vpop.permute.xlu0 %343 }
 0x196   : > { %v349_v16 = vsel %vm294_vm2, %v344_v15, 0 }
 0x197   : > { %v444_v17 = vpop.permute.xlu1 %443  ;;  %2388 = vmatpush3.bf16.xpose.msra.mxu0 %v349_v16 }
 0x198   : > { %2399 = vmatprep.subr.bf16.mxu0 %v2812_v4 }
 0x199   : > { %v393_v18 = vpop.permute.xlu0 %392 }
 0x19a   : > { %2384 = vmatmul.mubr.msk.bf16.vlgmr.msra.gmra.mxu1 %vm294_vm2, %v289_v10 }
 0x19b   : > { %v548_v20 = vpop.permute.xlu1 %547  ;;  %2394 = vmatpush3.bf16.xpose.msra.mxu1 %v400_v19  ;;  %2395 = vmatprep.mubr.msk.bf16.mxu1 %vm2813_vm1, %v2812_v4 }
 0x19c   : > { %2405 = vmatprep.subr.bf16.mxu1 %v2812_v4  ;;  %v553_v28 = vsel %vm294_vm2, %v548_v20, 0 }
 0x19d   : > { %v497_v21 = vpop.permute.xlu0 %496 }
 0x19e   : > { %2390 = vmatmul.mubr.msk.bf16.vlgmr.msra.gmra.mxu0 %vm294_vm2, %v3025_v8  ;;  %v502_v25 = vsel %vm294_vm2, %v497_v21, 0 }
 0x19f   : > { %v546_v23 = vpop.permute.xlu1 %545  ;;  %2400 = vmatpush3.bf16.xpose.msra.mxu0 %v451_v22  ;;  %2401 = vmatprep.mubr.msk.bf16.mxu0 %vm2813_vm1, %v2812_v4 }
 0x1a0   : > { %2411 = vmatprep.subr.bf16.mxu0 %v2812_v4 }
 0x1a1   : > { %v495_v24 = vpop.permute.xlu0 %494 }
 0x1a2   : > { %2396 = vmatmul.mubr.msk.bf16.vlgmr.msra.gmra.mxu1 %vm294_vm2, %v393_v18 }
 0x1a3   : > { %v650_v26 = vpop.permute.xlu1 %649  ;;  %2406 = vmatpush3.bf16.xpose.msra.mxu1 %v502_v25  ;;  %2407 = vmatprep.mubr.msk.bf16.mxu1 %vm2813_vm1, %v2812_v4 }
 0x1a4   : > { %2417 = vmatprep.subr.bf16.mxu1 %v2812_v4  ;;  %v655_v34 = vsel %vm294_vm2, %v650_v26, 0 }
 0x1a5   : > { %v599_v27 = vpop.permute.xlu0 %598 }
 0x1a6   : > { %2402 = vmatmul.mubr.msk.bf16.vlgmr.msra.gmra.mxu0 %vm294_vm2, %v444_v17  ;;  %v604_v31 = vsel %vm294_vm2, %v599_v27, 0 }
 0x1a7   : > { %v648_v29 = vpop.permute.xlu1 %647  ;;  %2412 = vmatpush3.bf16.xpose.msra.mxu0 %v553_v28  ;;  %2413 = vmatprep.mubr.msk.bf16.mxu0 %vm2813_vm1, %v2812_v4 }
 0x1a8   : > { %2423 = vmatprep.subr.bf16.mxu0 %v2812_v4 }
 0x1a9   : > { %v597_v30 = vpop.permute.xlu0 %596 }
 0x1aa   : > { %2408 = vmatmul.mubr.msk.bf16.vlgmr.msra.gmra.mxu1 %vm294_vm2, %v495_v24 }
 0x1ab   : > { %v752_v32 = vpop.permute.xlu1 %751  ;;  %2418 = vmatpush3.bf16.xpose.msra.mxu1 %v604_v31  ;;  %2419 = vmatprep.mubr.msk.bf16.mxu1 %vm2813_vm1, %v2812_v4 }
 0x1ac   : > { %2429 = vmatprep.subr.bf16.mxu1 %v2812_v4  ;;  %v757_v40 = vsel %vm294_vm2, %v752_v32, 0 }
 0x1ad   : > { %v701_v33 = vpop.permute.xlu0 %700 }
 0x1ae   : > { %2414 = vmatmul.mubr.msk.bf16.vlgmr.msra.gmra.mxu0 %vm294_vm2, %v546_v23  ;;  %v706_v37 = vsel %vm294_vm2, %v701_v33, 0 }
 0x1af   : > { %v750_v35 = vpop.permute.xlu1 %749  ;;  %2424 = vmatpush3.bf16.xpose.msra.mxu0 %v655_v34  ;;  %2425 = vmatprep.mubr.msk.bf16.mxu0 %vm2813_vm1, %v2812_v4 }
 0x1b0   : > { %2435 = vmatprep.subr.bf16.mxu0 %v2812_v4 }
 0x1b1   : > { %v699_v36 = vpop.permute.xlu0 %698 }
 0x1b2   : > { %2420 = vmatmul.mubr.msk.bf16.vlgmr.msra.gmra.mxu1 %vm294_vm2, %v597_v30 }
 0x1b3   : > { %v854_v38 = vpop.permute.xlu1 %853  ;;  %2430 = vmatpush3.bf16.xpose.msra.mxu1 %v706_v37  ;;  %2431 = vmatprep.mubr.msk.bf16.mxu1 %vm2813_vm1, %v2812_v4 }
 0x1b4   : > { %2441 = vmatprep.subr.bf16.mxu1 %v2812_v4  ;;  %v859_v45 = vsel %vm294_vm2, %v854_v38, 0 }
 0x1b5   : > { %v803_v39 = vpop.permute.xlu0 %802 }
 0x1b6   : > { %2426 = vmatmul.mubr.msk.bf16.vlgmr.msra.gmra.mxu0 %vm294_vm2, %v648_v29  ;;  %v808_v43 = vsel %vm294_vm2, %v803_v39, 0 }
 0x1b7   : > { %2436 = vmatpush3.bf16.xpose.msra.mxu0 %v757_v40  ;;  %2437 = vmatprep.mubr.msk.bf16.mxu0 %vm2813_vm1, %v2812_v4  ;;  %v852_v41 = vpop.permute.xlu1 %851 }
 0x1b8   : > { %2447 = vmatprep.subr.bf16.mxu0 %v2812_v4 }
 0x1b9   : > { %v801_v42 = vpop.permute.xlu0 %800 }
 0x1ba   : > { %2432 = vmatmul.mubr.msk.bf16.vlgmr.msra.gmra.mxu1 %vm294_vm2, %v699_v36 }
 0x1bb   : > { %2442 = vmatpush3.bf16.xpose.msra.mxu1 %v808_v43  ;;  %2443 = vmatprep.mubr.msk.bf16.mxu1 %vm2813_vm1, %v2812_v4  ;;  %v956_v46 = vpop.permute.xlu1 %955 }
 0x1bc   : > { %2453 = vmatprep.subr.bf16.mxu1 %v2812_v4  ;;  %v961_v50 = vsel %vm294_vm2, %v956_v46, 0 }
 0x1bd   : > { %v905_v44 = vpop.permute.xlu0 %904 }
 0x1be   : > { %2438 = vmatmul.mubr.msk.bf16.vlgmr.msra.gmra.mxu0 %vm294_vm2, %v750_v35  ;;  %v910_v48 = vsel %vm294_vm2, %v905_v44, 0 }
 0x1bf   : > { %2448 = vmatpush3.bf16.xpose.msra.mxu0 %v859_v45  ;;  %2449 = vmatprep.mubr.msk.bf16.mxu0 %vm2813_vm1, %v2812_v4  ;;  %v954_v49 = vpop.permute.xlu1 %953 }
 0x1c0   : > { %2459 = vmatprep.subr.bf16.mxu0 %v2812_v4 }
 0x1c1   : > { %v903_v47 = vpop.permute.xlu0 %902 }
 0x1c2   : > { %2444 = vmatmul.mubr.msk.bf16.vlgmr.msra.gmra.mxu1 %vm294_vm2, %v801_v42 }
 0x1c3   : > { %2454 = vmatpush3.bf16.xpose.msra.mxu1 %v910_v48  ;;  %2455 = vmatprep.mubr.msk.bf16.mxu1 %vm2813_vm1, %v2812_v4  ;;  %v1058_v53 = vpop.permute.xlu1 %1057 }
 0x1c4   : > { %2465 = vmatprep.subr.bf16.mxu1 %v2812_v4  ;;  %v1063_v54 = vsel %vm294_vm2, %v1058_v53, 0 }
 0x1c5   : > { %v1007_v51 = vpop.permute.xlu0 %1006 }
 0x1c6   : > { %2450 = vmatmul.mubr.msk.bf16.vlgmr.msra.gmra.mxu0 %vm294_vm2, %v852_v41  ;;  %v1012_v52 = vsel %vm294_vm2, %v1007_v51, 0 }
 0x1c7   : > { %2460 = vmatpush3.bf16.xpose.msra.mxu0 %v961_v50  ;;  %2461 = vmatprep.mubr.msk.bf16.mxu0 %vm2813_vm1, %v2812_v4  ;;  %v1056_v56 = vpop.permute.xlu1 %1055 }
 0x1c8   : > { %2471 = vmatprep.subr.bf16.mxu0 %v2812_v4 }
 0x1c9   : > { %v1005_v55 = vpop.permute.xlu0 %1004 }
 0x1ca   : > { %2456 = vmatmul.mubr.msk.bf16.vlgmr.msra.gmra.mxu1 %vm294_vm2, %v903_v47 }
 0x1cb   : > { %2466 = vmatpush3.bf16.xpose.msra.mxu1 %v1012_v52  ;;  %2467 = vmatprep.mubr.msk.bf16.mxu1 %vm2813_vm1, %v2812_v4 }
 0x1ce   : > { %2462 = vmatmul.mubr.msk.bf16.vlgmr.msra.gmra.mxu0 %vm294_vm2, %v954_v49 }
 0x1cf   : > { %2472 = vmatpush3.bf16.xpose.msra.mxu0 %v1063_v54  ;;  %2473 = vmatprep.mubr.msk.bf16.mxu0 %vm2813_vm1, %v2812_v4 }
 0x1d2   : > { %2468 = vmatmul.mubr.msk.bf16.vlgmr.msra.gmra.mxu1 %vm294_vm2, %v1005_v55 }
 0x1d6   : > { %2474 = vmatmul.mubr.msk.bf16.vlgmr.msra.gmra.mxu0 %vm294_vm2, %v1056_v56 }
 0x25a   : > { %v335_v57 = vpop.f32.mrf.mxu1 }
 0x25b   : > { %v3131_v58 = vmul.f32 0.35355338, %v335_v57 }
 0x25c   : > { %v2385_v59 = vpop.f32.mrf.mxu1 }
 0x25d   : > { %v1139_v60 = vsel %vm1138_vm3, %v3131_v58, -inf }
 0x25e   : > { %1140 = vmax.xlane.f32.xlu0 %v1139_v60  ;;  %v338_v61 = vpop.f32.mrf.mxu1  ;;  %v385_v62 = vpop.f32.mrf.mxu0 }
 0x25f   : > { %v3135_v63 = vmul.f32 0.35355338, %v385_v62  ;;  %v3137_v2 = vmul.f32 0.35355338, %v338_v61 }
 0x260   : > { %v2386_v0 = vpop.f32.mrf.mxu1  ;;  %v2391_v1 = vpop.f32.mrf.mxu0 }
 0x261   : > { %v1187_v3 = vsel %vm1138_vm3, %v3135_v63, -inf  ;;  %v1142_v10 = vsel %vm1138_vm3, %v3137_v2, -inf }
 0x262   : > { %1188 = vmax.xlane.f32.xlu1 %v1187_v3  ;;  %v388_v4 = vpop.f32.mrf.mxu0  ;;  %v436_v5 = vpop.f32.mrf.mxu1 }
 0x263   : > { %v3141_v6 = vmul.f32 0.35355338, %v388_v4  ;;  %v3143_v9 = vmul.f32 0.35355338, %v436_v5 }
 0x264   : > { %v2392_v7 = vpop.f32.mrf.mxu0  ;;  %v2397_v8 = vpop.f32.mrf.mxu1 }
 0x265   : > { %v1190_v11 = vsel %vm1138_vm3, %v3141_v6, -inf  ;;  %v1145_v18 = vsel %vm1138_vm3, %v3143_v9, -inf }
 0x266   : > { %1143 = vmax.xlane.f32.xlu1 %v1142_v10  ;;  %1191 = vmax.xlane.f32.xlu0 %v1190_v11  ;;  %v439_v12 = vpop.f32.mrf.mxu1  ;;  %v487_v13 = vpop.f32.mrf.mxu0 }
 0x267   : > { %v3149_v14 = vmul.f32 0.35355338, %v487_v13  ;;  %v3157_v24 = vmul.f32 0.35355338, %v439_v12 }
 0x268   : > { %v2398_v15 = vpop.f32.mrf.mxu1  ;;  %v2403_v16 = vpop.f32.mrf.mxu0 }
 0x269   : > { %v1193_v17 = vsel %vm1138_vm3, %v3149_v14, -inf  ;;  %v1148_v33 = vsel %vm1138_vm3, %v3157_v24, -inf }
 0x26a   : > { %1194 = vmax.xlane.f32.xlu1 %v1193_v17  ;;  %v490_v19 = vpop.f32.mrf.mxu0  ;;  %1146 = vmax.xlane.f32.xlu0 %v1145_v18  ;;  %v538_v20 = vpop.f32.mrf.mxu1 }
 0x26b   : > { %v3155_v21 = vmul.f32 0.35355338, %v490_v19  ;;  %v3163_v31 = vmul.f32 0.35355338, %v538_v20 }
 0x26c   : > { %v2404_v22 = vpop.f32.mrf.mxu0  ;;  %v2409_v23 = vpop.f32.mrf.mxu1 }
 0x26d   : > { %v1196_v25 = vsel %vm1138_vm3, %v3155_v21, -inf  ;;  %v1151_v41 = vsel %vm1138_vm3, %v3163_v31, -inf }
 0x26e   : > { %v589_v26 = vpop.f32.mrf.mxu0  ;;  %1197 = vmax.xlane.f32.xlu0 %v1196_v25  ;;  %v541_v27 = vpop.f32.mrf.mxu1 }
 0x26f   : > { %v3161_v28 = vmul.f32 0.35355338, %v589_v26  ;;  %v3171_v39 = vmul.f32 0.35355338, %v541_v27 }
 0x270   : > { %v2410_v29 = vpop.f32.mrf.mxu1  ;;  %v2415_v30 = vpop.f32.mrf.mxu0 }
 0x271   : > { %v1199_v32 = vsel %vm1138_vm3, %v3161_v28, -inf  ;;  %v1154_v49 = vsel %vm1138_vm3, %v3171_v39, -inf }
 0x272   : > { %1200 = vmax.xlane.f32.xlu1 %v1199_v32  ;;  %v592_v34 = vpop.f32.mrf.mxu0  ;;  %1149 = vmax.xlane.f32.xlu0 %v1148_v33  ;;  %v640_v35 = vpop.f32.mrf.mxu1 }
 0x273   : > { %v3169_v36 = vmul.f32 0.35355338, %v592_v34  ;;  %v3179_v47 = vmul.f32 0.35355338, %v640_v35 }
 0x274   : > { %v2416_v37 = vpop.f32.mrf.mxu0  ;;  %v2421_v38 = vpop.f32.mrf.mxu1 }
 0x275   : > { %v1202_v40 = vsel %vm1138_vm3, %v3169_v36, -inf  ;;  %v1157_v57 = vsel %vm1138_vm3, %v3179_v47, -inf }
 0x276   : > { %v691_v42 = vpop.f32.mrf.mxu0  ;;  %1203 = vmax.xlane.f32.xlu0 %v1202_v40  ;;  %1152 = vmax.xlane.f32.xlu1 %v1151_v41  ;;  %v643_v43 = vpop.f32.mrf.mxu1 }
 0x277   : > { %v3177_v44 = vmul.f32 0.35355338, %v691_v42  ;;  %v3187_v55 = vmul.f32 0.35355338, %v643_v43 }
 0x278   : > { %v2422_v45 = vpop.f32.mrf.mxu1  ;;  %v2427_v46 = vpop.f32.mrf.mxu0 }
 0x279   : > { %v1205_v48 = vsel %vm1138_vm3, %v3177_v44, -inf  ;;  %v1160_v4 = vsel %vm1138_vm3, %v3187_v55, -inf }
 0x27a   : > { %v694_v50 = vpop.f32.mrf.mxu0  ;;  %1206 = vmax.xlane.f32.xlu1 %v1205_v48  ;;  %1155 = vmax.xlane.f32.xlu0 %v1154_v49  ;;  %v742_v51 = vpop.f32.mrf.mxu1 }
 0x27b   : > { %v3185_v52 = vmul.f32 0.35355338, %v694_v50  ;;  %v3195_v1 = vmul.f32 0.35355338, %v742_v51 }
 0x27c   : > { %v2428_v53 = vpop.f32.mrf.mxu0  ;;  %v2433_v54 = vpop.f32.mrf.mxu1 }
 0x27d   : > { %v1208_v56 = vsel %vm1138_vm3, %v3185_v52, -inf  ;;  %v1163_v15 = vsel %vm1138_vm3, %v3195_v1, -inf }
 0x27e   : > { %v793_v59 = vpop.f32.mrf.mxu0  ;;  %1209 = vmax.xlane.f32.xlu0 %v1208_v56  ;;  %1158 = vmax.xlane.f32.xlu1 %v1157_v57  ;;  %v745_v60 = vpop.f32.mrf.mxu1 }
 0x27f   : > { %v3193_v61 = vmul.f32 0.35355338, %v793_v59  ;;  %v3203_v12 = vmul.f32 0.35355338, %v745_v60 }
 0x280   : > { %v2434_v62 = vpop.f32.mrf.mxu1  ;;  %v2439_v0 = vpop.f32.mrf.mxu0 }
 0x281   : > { %v1211_v3 = vsel %vm1138_vm3, %v3193_v61, -inf  ;;  %v1166_v25 = vsel %vm1138_vm3, %v3203_v12, -inf }
 0x282   : > { %v796_v5 = vpop.f32.mrf.mxu0  ;;  %1212 = vmax.xlane.f32.xlu1 %v1211_v3  ;;  %1161 = vmax.xlane.f32.xlu0 %v1160_v4  ;;  %v844_v7 = vpop.f32.mrf.mxu1 }
 0x283   : > { %v3201_v8 = vmul.f32 0.35355338, %v796_v5  ;;  %v3211_v22 = vmul.f32 0.35355338, %v844_v7 }
 0x284   : > { %v2440_v10 = vpop.f32.mrf.mxu0  ;;  %v2445_v11 = vpop.f32.mrf.mxu1 }
 0x285   : > { %v1214_v13 = vsel %vm1138_vm3, %v3201_v8, -inf  ;;  %v1169_v35 = vsel %vm1138_vm3, %v3211_v22, -inf }
 0x286   : > { %v895_v16 = vpop.f32.mrf.mxu0  ;;  %1215 = vmax.xlane.f32.xlu0 %v1214_v13  ;;  %1164 = vmax.xlane.f32.xlu1 %v1163_v15  ;;  %v847_v17 = vpop.f32.mrf.mxu1 }
 0x287   : > { %v3209_v18 = vmul.f32 0.35355338, %v895_v16  ;;  %v3219_v33 = vmul.f32 0.35355338, %v847_v17 }
 0x288   : > { %v2446_v19 = vpop.f32.mrf.mxu1  ;;  %v2451_v20 = vpop.f32.mrf.mxu0 }
 0x289   : > { %v1217_v23 = vsel %vm1138_vm3, %v3209_v18, -inf  ;;  %v1172_v46 = vsel %vm1138_vm3, %v3219_v33, -inf }
 0x28a   : > { %v898_v26 = vpop.f32.mrf.mxu0  ;;  %1218 = vmax.xlane.f32.xlu1 %v1217_v23  ;;  %1167 = vmax.xlane.f32.xlu0 %v1166_v25  ;;  %v946_v27 = vpop.f32.mrf.mxu1 }
 0x28b   : > { %v3217_v29 = vmul.f32 0.35355338, %v898_v26  ;;  %v3227_v43 = vmul.f32 0.35355338, %v946_v27 }
 0x28c   : > { %v2452_v30 = vpop.f32.mrf.mxu0  ;;  %v2457_v32 = vpop.f32.mrf.mxu1 }
 0x28d   : > { %v1220_v34 = vsel %vm1138_vm3, %v3217_v29, -inf  ;;  %v1175_v59 = vsel %vm1138_vm3, %v3227_v43, -inf }
 0x28e   : > { %v997_v37 = vpop.f32.mrf.mxu0  ;;  %1221 = vmax.xlane.f32.xlu0 %v1220_v34  ;;  %1170 = vmax.xlane.f32.xlu1 %v1169_v35  ;;  %v949_v38 = vpop.f32.mrf.mxu1 }
 0x28f   : > { %v3225_v40 = vmul.f32 0.35355338, %v997_v37  ;;  %v3235_v54 = vmul.f32 0.35355338, %v949_v38 }
 0x290   : > { %v2458_v41 = vpop.f32.mrf.mxu1  ;;  %v2463_v42 = vpop.f32.mrf.mxu0 }
 0x291   : > { %v1223_v45 = vsel %vm1138_vm3, %v3225_v40, -inf  ;;  %v1178_v7 = vsel %vm1138_vm3, %v3235_v54, -inf }
 0x292   : > { %v1000_v48 = vpop.f32.mrf.mxu0  ;;  %1224 = vmax.xlane.f32.xlu1 %v1223_v45  ;;  %1173 = vmax.xlane.f32.xlu0 %v1172_v46  ;;  %v1048_v49 = vpop.f32.mrf.mxu1 }
 0x293   : > { %v3233_v50 = vmul.f32 0.35355338, %v1000_v48  ;;  %v3237_v56 = vmul.f32 0.35355338, %v1048_v49 }
 0x294   : > { %v2464_v51 = vpop.f32.mrf.mxu0  ;;  %v2469_v53 = vpop.f32.mrf.mxu1 }
 0x295   : > { %v1226_v57 = vsel %vm1138_vm3, %v3233_v50, -inf  ;;  %v1181_v10 = vsel %vm1138_vm3, %v3237_v56, -inf }
 0x296   : > { %v1099_v60 = vpop.f32.mrf.mxu0  ;;  %1227 = vmax.xlane.f32.xlu0 %v1226_v57  ;;  %1176 = vmax.xlane.f32.xlu1 %v1175_v59  ;;  %v1051_v62 = vpop.f32.mrf.mxu1 }
 0x297   : > { %v3243_v4 = vmul.f32 0.35355338, %v1099_v60  ;;  %v3245_v5 = vmul.f32 0.35355338, %v1051_v62 }
 0x298   : > { %v2470_v0 = vpop.f32.mrf.mxu1  ;;  %v2475_v3 = vpop.f32.mrf.mxu0 }
 0x299   : > { %v1229_v16 = vsel %vm1138_vm3, %v3243_v4, -inf  ;;  %v1184_v17 = vsel %vm1138_vm3, %v3245_v5, -inf }
 0x29a   : > { %v1102_v11 = vpop.f32.mrf.mxu0  ;;  %1179 = vmax.xlane.f32.xlu0 %v1178_v7  ;;  %1182 = vmax.xlane.f32.xlu1 %v1181_v10 }
 0x29b   : > { %v3251_v15 = vmul.f32 0.35355338, %v1102_v11 }
 0x29c   : > { %v2476_v13 = vpop.f32.mrf.mxu0 }
 0x29d   : > { %v1232_v19 = vsel %vm1138_vm3, %v3251_v15, -inf }
 0x29e   : > { %1230 = vmax.xlane.f32.xlu1 %v1229_v16  ;;  %1185 = vmax.xlane.f32.xlu0 %v1184_v17 }
 0x2a2   : > { %1233 = vmax.xlane.f32.xlu0 %v1232_v19 }
 0x2e7   : > { %v1141_v20 = vpop.xlane.xlu0 %1140 }
 0x2e8   : > { %v1235_v23 = vsub.f32 %v3131_v58, %v1141_v20 }
 0x2ea   : > { %v1267_v27 = vmul.f32 1.442695, %v1235_v23 }
 0x2eb   : > { %v1189_v25 = vpop.xlane.xlu1 %1188 }
 0x2ec   : > { %v1251_v26 = vsub.f32 %v3135_v63, %v1189_v25 }
 0x2ee   : > { %v1299_v30 = vmul.f32 1.442695, %v1251_v26 }
 0x2ef   : > { %v1144_v32 = vpop.xlane.xlu1 %1143  ;;  %v1192_v34 = vpop.xlane.xlu0 %1191 }
 0x2f0   : > { %2554 = vpow2.f32 %v1299_v30  ;;  %v1236_v35 = vsub.f32 %v3137_v2, %v1144_v32  ;;  %v1252_v37 = vsub.f32 %v3141_v6, %v1192_v34 }
 0x2f1   : > { %2556 = vpow2.f32 %v1267_v27 }
 0x2f2   : > { %v1301_v38 = vmul.f32 1.442695, %v1252_v37  ;;  %v1269_v41 = vmul.f32 1.442695, %v1236_v35 }
 0x2f3   : > { %v1195_v42 = vpop.xlane.xlu1 %1194  ;;  %v1147_v45 = vpop.xlane.xlu0 %1146 }
 0x2f4   : > { %v1253_v46 = vsub.f32 %v3149_v14, %v1195_v42  ;;  %v1237_v58 = vsub.f32 %v3143_v9, %v1147_v45  ;;  %2558 = vpow2.f32 %v1301_v38 }
 0x2f5   : > { %2560 = vpow2.f32 %v1269_v41 }
 0x2f6   : > { %v1303_v63 = vmul.f32 1.442695, %v1253_v46  ;;  %v1271_v48 = vmul.f32 1.442695, %v1237_v58 }
 0x2f7   : > { %v1198_v49 = vpop.xlane.xlu0 %1197 }
 0x2f8   : > { %2562 = vpow2.f32 %v1303_v63  ;;  %v1254_v51 = vsub.f32 %v3155_v21, %v1198_v49 }
 0x2f9   : > { %2564 = vpow2.f32 %v1271_v48 }
 0x2fa   : > { %v1305_v2 = vmul.f32 1.442695, %v1254_v51 }
 0x2fb   : > { %v1201_v6 = vpop.xlane.xlu1 %1200  ;;  %v1150_v53 = vpop.xlane.xlu0 %1149 }
 0x2fc   : > { %2566 = vpow2.f32 %v1305_v2  ;;  %v1255_v57 = vsub.f32 %v3161_v28, %v1201_v6  ;;  %v1238_v59 = vsub.f32 %v3157_v24, %v1150_v53 }
 0x2fd   : > { %v3268_v14 = vpop.eup %2554 }
 0x2fe   : > { %v1307_v9 = vmul.f32 1.442695, %v1255_v57  ;;  %v1273_v60 = vmul.f32 1.442695, %v1238_v59  ;;  %v1379_v62 = vsel %vm1138_vm3, %v3268_v14, 0.0  ;;  %v3272_v0 = vpop.eup %2556 }
 0x2ff   : > { %v1153_v3 = vpop.xlane.xlu1 %1152  ;;  %1380 = vadd.xlane.f32.xlu1 %v1379_v62  ;;  %v1204_v21 = vpop.xlane.xlu0 %1203  ;;  %v1331_v13 = vsel %vm1138_vm3, %v3272_v0, 0.0 }
 0x300   : > { %2568 = vpow2.f32 %v1307_v9  ;;  %v1239_v7 = vsub.f32 %v3163_v31, %v1153_v3  ;;  %v1256_v10 = vsub.f32 %v3169_v36, %v1204_v21 }
 0x301   : > { %2570 = vpow2.f32 %v1273_v60  ;;  %v3276_v28 = vpop.eup %2558 }
 0x302   : > { %v1275_v24 = vmul.f32 1.442695, %v1239_v7  ;;  %v1309_v11 = vmul.f32 1.442695, %v1256_v10  ;;  %v1382_v17 = vsel %vm1138_vm3, %v3276_v28, 0.0  ;;  %v3282_v20 = vpop.eup %2560 }
 0x303   : > { %v1207_v16 = vpop.xlane.xlu1 %1206  ;;  %1332 = vadd.xlane.f32.xlu1 %v1331_v13  ;;  %v1156_v19 = vpop.xlane.xlu0 %1155  ;;  %1383 = vadd.xlane.f32.xlu0 %v1382_v17  ;;  %v1334_v34 = vsel %vm1138_vm3, %v3282_v20, 0.0 }
 0x304   : > { %2572 = vpow2.f32 %v1275_v24  ;;  %v1257_v31 = vsub.f32 %v3177_v44, %v1207_v16  ;;  %v1240_v36 = vsub.f32 %v3171_v39, %v1156_v19 }
 0x305   : > { %v3286_v23 = vpop.eup %2562  ;;  %2574 = vpow2.f32 %v1309_v11 }
 0x306   : > { %v1311_v25 = vmul.f32 1.442695, %v1257_v31  ;;  %v1277_v26 = vmul.f32 1.442695, %v1240_v36  ;;  %v1385_v27 = vsel %vm1138_vm3, %v3286_v23, 0.0  ;;  %v3290_v30 = vpop.eup %2564 }
 0x307   : > { %v1159_v32 = vpop.xlane.xlu1 %1158  ;;  %1386 = vadd.xlane.f32.xlu1 %v1385_v27  ;;  %v1210_v35 = vpop.xlane.xlu0 %1209  ;;  %1335 = vadd.xlane.f32.xlu0 %v1334_v34  ;;  %v1337_v42 = vsel %vm1138_vm3, %v3290_v30, 0.0 }
 0x308   : > { %2576 = vpow2.f32 %v1311_v25  ;;  %v1241_v44 = vsub.f32 %v3179_v47, %v1159_v32  ;;  %v1258_v39 = vsub.f32 %v3185_v52, %v1210_v35 }
 0x309   : > { %v3296_v37 = vpop.eup %2566  ;;  %2578 = vpow2.f32 %v1277_v26 }
 0x30a   : > { %v1279_v38 = vmul.f32 1.442695, %v1241_v44  ;;  %v1313_v41 = vmul.f32 1.442695, %v1258_v39  ;;  %v1388_v45 = vsel %vm1138_vm3, %v3296_v37, 0.0 }
 0x30b   : > { %v1213_v46 = vpop.xlane.xlu1 %1212  ;;  %1338 = vadd.xlane.f32.xlu1 %v1337_v42  ;;  %v1162_v58 = vpop.xlane.xlu0 %1161  ;;  %1389 = vadd.xlane.f32.xlu0 %v1388_v45 }
 0x30c   : > { %2580 = vpow2.f32 %v1279_v38  ;;  %v1259_v47 = vsub.f32 %v3193_v61, %v1213_v46  ;;  %v1242_v52 = vsub.f32 %v3187_v55, %v1162_v58 }
 0x30d   : > { %v3304_v63 = vpop.eup %2568  ;;  %2582 = vpow2.f32 %v1313_v41 }
 0x30e   : > { %v3306_v48 = vpop.eup %2570  ;;  %v1315_v49 = vmul.f32 1.442695, %v1259_v47  ;;  %v1281_v51 = vmul.f32 1.442695, %v1242_v52  ;;  %v1391_v2 = vsel %vm1138_vm3, %v3304_v63, 0.0 }
 0x30f   : > { %v1165_v6 = vpop.xlane.xlu1 %1164  ;;  %1392 = vadd.xlane.f32.xlu1 %v1391_v2  ;;  %v1340_v53 = vsel %vm1138_vm3, %v3306_v48, 0.0  ;;  %v1216_v57 = vpop.xlane.xlu0 %1215 }
 0x310   : > { %2584 = vpow2.f32 %v1315_v49  ;;  %v1243_v61 = vsub.f32 %v3195_v1, %v1165_v6  ;;  %1341 = vadd.xlane.f32.xlu0 %v1340_v53  ;;  %v1260_v55 = vsub.f32 %v3201_v8, %v1216_v57 }
 0x311   : > { %v3314_v59 = vpop.eup %2572  ;;  %2586 = vpow2.f32 %v1281_v51 }
 0x312   : > { %v3316_v9 = vpop.eup %2574  ;;  %v1283_v60 = vmul.f32 1.442695, %v1243_v61  ;;  %v1317_v62 = vmul.f32 1.442695, %v1260_v55  ;;  %v1343_v3 = vsel %vm1138_vm3, %v3314_v59, 0.0 }
 0x313   : > { %v1219_v21 = vpop.xlane.xlu1 %1218  ;;  %1344 = vadd.xlane.f32.xlu1 %v1343_v3  ;;  %v1394_v7 = vsel %vm1138_vm3, %v3316_v9, 0.0  ;;  %v1168_v10 = vpop.xlane.xlu0 %1167 }
 0x314   : > { %2588 = vpow2.f32 %v1283_v60  ;;  %v1261_v1 = vsub.f32 %v3209_v18, %v1219_v21  ;;  %1395 = vadd.xlane.f32.xlu0 %v1394_v7  ;;  %v1244_v8 = vsub.f32 %v3203_v12, %v1168_v10 }
 0x315   : > { %v3324_v24 = vpop.eup %2576  ;;  %2590 = vpow2.f32 %v1317_v62 }
 0x316   : > { %v3326_v11 = vpop.eup %2578  ;;  %v1319_v13 = vmul.f32 1.442695, %v1261_v1  ;;  %v1285_v16 = vmul.f32 1.442695, %v1244_v8  ;;  %v1397_v17 = vsel %vm1138_vm3, %v3324_v24, 0.0 }
 0x317   : > { %v1171_v19 = vpop.xlane.xlu1 %1170  ;;  %1398 = vadd.xlane.f32.xlu1 %v1397_v17  ;;  %v1346_v31 = vsel %vm1138_vm3, %v3326_v11, 0.0  ;;  %v1222_v36 = vpop.xlane.xlu0 %1221 }
 0x318   : > { %2592 = vpow2.f32 %v1319_v13  ;;  %v1245_v18 = vsub.f32 %v3211_v22, %v1171_v19  ;;  %1347 = vadd.xlane.f32.xlu0 %v1346_v31  ;;  %v1262_v12 = vsub.f32 %v3217_v29, %v1222_v36 }
 0x319   : > { %v3334_v25 = vpop.eup %2580  ;;  %2594 = vpow2.f32 %v1285_v16 }
 0x31a   : > { %v3336_v26 = vpop.eup %2582  ;;  %v1287_v27 = vmul.f32 1.442695, %v1245_v18  ;;  %v1321_v32 = vmul.f32 1.442695, %v1262_v12  ;;  %v1349_v34 = vsel %vm1138_vm3, %v3334_v25, 0.0 }
 0x31b   : > { %v1225_v35 = vpop.xlane.xlu1 %1224  ;;  %1350 = vadd.xlane.f32.xlu1 %v1349_v34  ;;  %v1400_v44 = vsel %vm1138_vm3, %v3336_v26, 0.0  ;;  %v1174_v39 = vpop.xlane.xlu0 %1173 }
 0x31c   : > { %2596 = vpow2.f32 %v1287_v27  ;;  %v1263_v22 = vsub.f32 %v3225_v40, %v1225_v35  ;;  %1401 = vadd.xlane.f32.xlu0 %v1400_v44  ;;  %v1246_v29 = vsub.f32 %v3219_v33, %v1174_v39 }
 0x31d   : > { %v3344_v38 = vpop.eup %2584  ;;  %2598 = vpow2.f32 %v1321_v32 }
 0x31e   : > { %v3346_v41 = vpop.eup %2586  ;;  %v1323_v42 = vmul.f32 1.442695, %v1263_v22  ;;  %v1289_v45 = vmul.f32 1.442695, %v1246_v29  ;;  %v1403_v46 = vsel %vm1138_vm3, %v3344_v38, 0.0 }
 0x31f   : > { %v1177_v58 = vpop.xlane.xlu1 %1176  ;;  %1404 = vadd.xlane.f32.xlu1 %v1403_v46  ;;  %v1352_v47 = vsel %vm1138_vm3, %v3346_v41, 0.0  ;;  %v1228_v52 = vpop.xlane.xlu0 %1227 }
 0x320   : > { %2600 = vpow2.f32 %v1323_v42  ;;  %v1247_v40 = vsub.f32 %v3227_v43, %v1177_v58  ;;  %1353 = vadd.xlane.f32.xlu0 %v1352_v47  ;;  %v1264_v33 = vsub.f32 %v3233_v50, %v1228_v52 }
 0x321   : > { %v3354_v49 = vpop.eup %2588  ;;  %2602 = vpow2.f32 %v1289_v45 }
 0x322   : > { %v3356_v51 = vpop.eup %2590  ;;  %v1291_v2 = vmul.f32 1.442695, %v1247_v40  ;;  %v1325_v6 = vmul.f32 1.442695, %v1264_v33  ;;  %v1355_v53 = vsel %vm1138_vm3, %v3354_v49, 0.0 }
 0x323   : > { %v1183_v57 = vpop.xlane.xlu1 %1182  ;;  %1356 = vadd.xlane.f32.xlu1 %v1355_v53  ;;  %v1406_v61 = vsel %vm1138_vm3, %v3356_v51, 0.0  ;;  %v1180_v55 = vpop.xlane.xlu0 %1179 }
 0x324   : > { %2604 = vpow2.f32 %v1291_v2  ;;  %v1249_v43 = vsub.f32 %v3237_v56, %v1183_v57  ;;  %1407 = vadd.xlane.f32.xlu0 %v1406_v61  ;;  %v1248_v50 = vsub.f32 %v3235_v54, %v1180_v55 }
 0x325   : > { %v3364_v60 = vpop.eup %2592  ;;  %2606 = vpow2.f32 %v1325_v6 }
 0x326   : > { %v3366_v62 = vpop.eup %2594  ;;  %v1295_v3 = vmul.f32 1.442695, %v1249_v43  ;;  %v1293_v21 = vmul.f32 1.442695, %v1248_v50  ;;  %v1409_v7 = vsel %vm1138_vm3, %v3364_v60, 0.0 }
 0x327   : > { %v1231_v10 = vpop.xlane.xlu1 %1230  ;;  %1410 = vadd.xlane.f32.xlu1 %v1409_v7  ;;  %v1358_v1 = vsel %vm1138_vm3, %v3366_v62, 0.0  ;;  %v1186_v8 = vpop.xlane.xlu0 %1185 }
 0x328   : > { %2608 = vpow2.f32 %v1295_v3  ;;  %v1265_v56 = vsub.f32 %v3243_v4, %v1231_v10  ;;  %1359 = vadd.xlane.f32.xlu0 %v1358_v1  ;;  %v1250_v54 = vsub.f32 %v3245_v5, %v1186_v8 }
 0x329   : > { %v3374_v13 = vpop.eup %2596  ;;  %2610 = vpow2.f32 %v1293_v21 }
 0x32a   : > { %v3376_v16 = vpop.eup %2598  ;;  %v1327_v17 = vmul.f32 1.442695, %v1265_v56  ;;  %v1297_v19 = vmul.f32 1.442695, %v1250_v54  ;;  %v1361_v31 = vsel %vm1138_vm3, %v3374_v13, 0.0 }
 0x32b   : > { %1362 = vadd.xlane.f32.xlu1 %v1361_v31  ;;  %v1412_v36 = vsel %vm1138_vm3, %v3376_v16, 0.0  ;;  %v1234_v18 = vpop.xlane.xlu0 %1233 }
 0x32c   : > { %2612 = vpow2.f32 %v1327_v17  ;;  %1413 = vadd.xlane.f32.xlu0 %v1412_v36  ;;  %v1266_v4 = vsub.f32 %v3251_v15, %v1234_v18 }
 0x32d   : > { %v3383_v5 = vpop.eup %2600  ;;  %2614 = vpow2.f32 %v1297_v19 }
 0x32e   : > { %v3385_v12 = vpop.eup %2602  ;;  %v1329_v27 = vmul.f32 1.442695, %v1266_v4  ;;  %v1415_v32 = vsel %vm1138_vm3, %v3383_v5, 0.0 }
 0x32f   : > { %1416 = vadd.xlane.f32.xlu1 %v1415_v32  ;;  %v1364_v34 = vsel %vm1138_vm3, %v3385_v12, 0.0 }
 0x330   : > { %2616 = vpow2.f32 %v1329_v27  ;;  %1365 = vadd.xlane.f32.xlu0 %v1364_v34 }
 0x331   : > { %v3391_v35 = vpop.eup %2604 }
 0x332   : > { %v3393_v44 = vpop.eup %2606  ;;  %v1367_v15 = vsel %vm1138_vm3, %v3391_v35, 0.0 }
 0x333   : > { %1368 = vadd.xlane.f32.xlu1 %v1367_v15  ;;  %v1418_v39 = vsel %vm1138_vm3, %v3393_v44, 0.0 }
 0x334   : > { %1419 = vadd.xlane.f32.xlu0 %v1418_v39 }
 0x335   : > { %v3399_v22 = vpop.eup %2608 }
 0x336   : > { %v3401_v29 = vpop.eup %2610  ;;  %v1373_v42 = vsel %vm1138_vm3, %v3399_v22, 0.0 }
 0x337   : > { %1374 = vadd.xlane.f32.xlu1 %v1373_v42  ;;  %v1370_v45 = vsel %vm1138_vm3, %v3401_v29, 0.0 }
 0x338   : > { %1371 = vadd.xlane.f32.xlu0 %v1370_v45 }
 0x339   : > { %v3407_v46 = vpop.eup %2612 }
 0x33a   : > { %v3409_v58 = vpop.eup %2614  ;;  %v1421_v47 = vsel %vm1138_vm3, %v3407_v46, 0.0 }
 0x33b   : > { %1422 = vadd.xlane.f32.xlu1 %v1421_v47  ;;  %v1376_v52 = vsel %vm1138_vm3, %v3409_v58, 0.0 }
 0x33c   : > { %1377 = vadd.xlane.f32.xlu0 %v1376_v52 }
 0x33d   : > { %v3415_v40 = vpop.eup %2616 }
 0x33e   : > { %v1424_v33 = vsel %vm1138_vm3, %v3415_v40, 0.0 }
 0x340   : > { %1425 = vadd.xlane.f32.xlu0 %v1424_v33 }
 0x388   : > { %v1381_v2 = vpop.xlane.xlu1 %1380 }
 0x389   : > { %2618 = vrcp.f32 %v1381_v2 }
 0x38c   : > { %v1333_v6 = vpop.xlane.xlu1 %1332  ;;  %v1384_v53 = vpop.xlane.xlu0 %1383 }
 0x38d   : > { %2620 = vrcp.f32 %v1333_v6 }
 0x38e   : > { %2622 = vrcp.f32 %v1384_v53 }
 0x390   : > { %v1387_v57 = vpop.xlane.xlu1 %1386  ;;  %v1336_v61 = vpop.xlane.xlu0 %1335 }
 0x391   : > { %2624 = vrcp.f32 %v1387_v57 }
 0x392   : > { %2626 = vrcp.f32 %v1336_v61  ;;  %v2829_v61 = vmov 1983009808  }
 0x394   : > { %v1339_v55 = vpop.xlane.xlu1 %1338  ;;  %v1390_v43 = vpop.xlane.xlu0 %1389 }
 0x395   : > { %2628 = vrcp.f32 %v1339_v55  ;;  %v1494_v55 = vunpack.c.l.s4 %v2829_v61 }
 0x396   : > { %2630 = vrcp.f32 %v1390_v43  ;;  %v2619_v32 = vpop.eup %2618  ;;  %v1496_v43 = vlaneseq }
 0x398   : > { %v1393_v50 = vpop.xlane.xlu1 %1392 }
 0x399   : > { %v1342_v3 = vpop.xlane.xlu0 %1341  ;;  %2632 = vrcp.f32 %v1393_v50 }
 0x39a   : > { %v2621_v34 = vpop.eup %2620 }
 0x39b   : > { %v2623_v39 = vpop.eup %2622 }
 0x39c   : > { %v1345_v21 = vpop.xlane.xlu1 %1344 }
 0x39d   : > { %v1396_v7 = vpop.xlane.xlu0 %1395 }
 0x39e   : > { %v2625_v45 = vpop.eup %2624 }
 0x39f   : > { %v3423_v47 = vpop.eup %2626 }
 0x3a0   : > { %v1399_v10 = vpop.xlane.xlu1 %1398 }
 0x3a1   : > { %v1348_v1 = vpop.xlane.xlu0 %1347  ;;  %2634 = vrcp.f32 %v1399_v10 }
 0x3a2   : > { %2636 = vrcp.f32 %v1342_v3  ;;  %v2629_v52 = vpop.eup %2628 }
 0x3a3   : > { %2638 = vrcp.f32 %v1345_v21  ;;  %v3425_v2 = vpop.eup %2630 }
 0x3a4   : > { %v1351_v8 = vpop.xlane.xlu1 %1350  ;;  %2640 = vrcp.f32 %v1396_v7 }
 0x3a5   : > { %v1402_v56 = vpop.xlane.xlu0 %1401  ;;  %2642 = vrcp.f32 %v1348_v1 }
 0x3a6   : > { %2644 = vrcp.f32 %v1351_v8  ;;  %v2633_v53 = vpop.eup %2632 }
 0x3a7   : > { %2646 = vrcp.f32 %v1402_v56  ;;  %v1495_v56 = vunpack.c.0.s8 %v1494_v55  ;;  %v1459_v55 = vmul.f32 %v2621_v34, %v3272_v0 }
 0x3a8   : > { %v1405_v54 = vpop.xlane.xlu1 %1404 }
 0x3a9   : > { %v1354_v17 = vpop.xlane.xlu0 %1353  ;;  %2648 = vrcp.f32 %v1405_v54  ;;  %v1497_v54 = vshrl.u32 %v1496_v43, 7 }
 0x3aa   : > { %2650 = vrcp.f32 %v1354_v17  ;;  %v2830_v17 = vmov 1934713408  }
 0x3ab   : > { %v3435_v43 = vsub.s32 %v1495_v56, %v1497_v54  ;;  %v1461_v56 = vmul.f32 %v2629_v52, %v3290_v30  ;;  %v3461_v52 = vmul.f32 %v3425_v2, %v3296_v37 }
 0x3ac   : > { %v1357_v19 = vpop.xlane.xlu1 %1356 }
 0x3ad   : > { %v1408_v31 = vpop.xlane.xlu0 %1407  ;;  %2652 = vrcp.f32 %v1357_v19  ;;  %v1558_v19 = vunpack.c.l.s4 %v2830_v17 }
 0x3ae   : > { %2654 = vrcp.f32 %v1408_v31  ;;  %v2635_v57 = vpop.eup %2634 }
 0x3af   : > { %v2637_v50 = vpop.eup %2636  ;;  %v1481_v1 = vmul.f32 %v2635_v57, %v3324_v24  ;;  %v1475_v24 = vmul.f32 %v2619_v32, %v3268_v14  ;;  %v3445_v14 = vmul.f32 %v2623_v39, %v3276_v28 }
 0x3b0   : > { %v1411_v36 = vpop.xlane.xlu1 %1410  ;;  %v2639_v21 = vpop.eup %2638 }
 0x3b1   : > { %v3419_v18 = vpop.xlane.xlu0 %1359  ;;  %v2641_v10 = vpop.eup %2640  ;;  %v1463_v61 = vmul.f32 %v2639_v21, %v3314_v59 }
 0x3b2   : > { %v2643_v8 = vpop.eup %2642 }
 0x3b3   : > { %v2645_v31 = vpop.eup %2644  ;;  %v1491_v32 = vcombine.low %v1459_v55, %v1463_v61 }
 0x3b4   : > { %v1363_v4 = vpop.xlane.xlu1 %1362  ;;  %v1465_v59 = vmul.f32 %v2645_v31, %v3334_v25 }
 0x3b5   : > { %v3421_v27 = vpop.xlane.xlu0 %1413  ;;  %2656 = vrcp.f32 %v1363_v4 }
 0x3b6   : > { %v1507_v39 = vcombine.low %v1461_v56, %v1465_v59 }
 0x3b8   : > { %v1417_v15 = vpop.xlane.xlu1 %1416 }
 0x3b9   : > { %v1366_v42 = vpop.xlane.xlu0 %1365  ;;  %2658 = vrcp.f32 %v1417_v15  ;;  %v1477_v15 = vmul.f32 %v2625_v45, %v3286_v23 }
 0x3bb   : > { %v1780_v25 = vcombine.high %v1477_v15, %v1481_v1 }
 0x3bc   : > { %v1369_v33 = vpop.xlane.xlu1 %1368 }
 0x3bd   : > { %v1420_v6 = vpop.xlane.xlu0 %1419  ;;  %2660 = vrcp.f32 %v1369_v33  ;;  %v2647_v33 = vpop.eup %2646 }
 0x3be   : > { %2662 = vrcp.f32 %v1411_v36  ;;  %v1479_v36 = vmul.f32 %v2633_v53, %v3304_v63  ;;  %v3438_v63 = vmul.f32 %v2641_v10, %v3316_v9 }
 0x3c0   : > { %v1375_v3 = vpop.xlane.xlu1 %1374  ;;  %v1763_v45 = vcombine.low %v1475_v24, %v1479_v36  ;;  %v1764_v34 = vcombine.high %v1475_v24, %v1479_v36  ;;  %v1899_v31 = vcombine.low %v3445_v14, %v3438_v63 }
 0x3c1   : > { %2664 = vrcp.f32 %v1375_v3  ;;  %v1372_v7 = vpop.xlane.xlu0 %1371  ;;  %v2649_v3 = vpop.eup %2648 }
 0x3c2   : > { %2666 = vrcp.f32 %v1366_v42  ;;  %v3432_v57 = vpop.eup %2650 }
 0x3c3   : > { %2668 = vrcp.f32 %v1420_v6  ;;  %v1779_v6 = vcombine.low %v1477_v15, %v1481_v1  ;;  %v2653_v23 = vpop.eup %2652  ;;  %v3464_v1 = vmul.f32 %v2637_v50, %v3306_v48 }
 0x3c4   : > { %2670 = vrcp.f32 %v1372_v7  ;;  %v1423_v4 = vpop.xlane.xlu1 %1422  ;;  %v1559_v7 = vunpack.c.0.s8 %v1558_v19  ;;  %v3442_v53 = vpop.eup %2654  ;;  %v1492_v19 = vcombine.high %v1459_v55, %v1463_v61  ;;  %v3476_v61 = vrot.slane %v1780_v25, %v3435_v43 }
 0x3c5   : > { %2672 = vrcp.f32 %v1423_v4  ;;  %v1378_v42 = vpop.xlane.xlu0 %1377  ;;  %v2657_v21 = vpop.eup %2656  ;;  %v1787_v9 = vrot.slane %v1779_v6, %v3435_v43  ;;  %v3473_v4 = vmul.f32 %v2643_v8, %v3326_v11  ;;  %v3485_v6 = vrot.slane %v1507_v39, %v3435_v43 }
 0x3c6   : > { %2674 = vrcp.f32 %v1378_v42  ;;  %v2659_v10 = vpop.eup %2658  ;;  %v3454_v17 = vsub.s32 %v1559_v7, %v1497_v54  ;;  %v1469_v2 = vmul.f32 %v2657_v21, %v3374_v13  ;;  %v3488_v11 = vrot.slane %v1492_v19, %v3435_v43 }
 0x3c7   : > { %2676 = vrcp.f32 %v3419_v18  ;;  %v3452_v18 = vmul.f32 %v3423_v47, %v3282_v20  ;;  %v3467_v20 = vrot.slane %v1491_v32, %v3435_v43  ;;  %v3470_v47 = vrot.slane %v1764_v34, %v3435_v43 }
 0x3c8   : > { %2678 = vrcp.f32 %v3421_v27  ;;  %v1771_v27 = vrot.slane %v1763_v45, %v3435_v43  ;;  %v1487_v42 = vmul.f32 %v2659_v10, %v3383_v5  ;;  %v1508_v8 = vcombine.high %v1461_v56, %v1465_v59 }
 0x3c9   : > { %v1426_v0 = vpop.xlane.xlu0 %1425  ;;  %v3491_v55 = vrot.slane %v1899_v31, %v3435_v43  ;;  %v3494_v13 = vmul.f32 %v2647_v33, %v3336_v26  ;;  %v1483_v5 = vmul.f32 %v2649_v3, %v3344_v38  ;;  %v1843_v59 = vcombine.low %v3470_v47, %v3476_v61 }
 0x3ca   : > { %2680 = vrcp.f32 %v1426_v0  ;;  %v2661_v28 = vpop.eup %2660  ;;  %v1828_v15 = vcombine.high %v1771_v27, %v1787_v9  ;;  %v1827_v36 = vcombine.low %v1771_v27, %v1787_v9  ;;  %v1627_v26 = vcombine.low %v3452_v18, %v3473_v4 }
 0x3cb   : > { %v2663_v30 = vpop.eup %2662  ;;  %v3480_v48 = vmul.f32 %v2661_v28, %v3391_v35  ;;  %v3497_v35 = vmul.f32 %v2653_v23, %v3354_v49  ;;  %v1795_v38 = vcombine.low %v1483_v5, %v1487_v42  ;;  %v3516_v34 = vmul.f32 %v3432_v57, %v3346_v41 }
 0x3cc   : > { %v3501_v0 = vrot.slane %v1828_v15, %v3454_v17  ;;  %v3504_v32 = vrot.slane %v1827_v36, %v3454_v17  ;;  %v1485_v49 = vmul.f32 %v2663_v30, %v3364_v60  ;;  %v1556_v56 = vcombine.high %v3467_v20, %v3485_v6 }
 0x3cd   : > { %v1523_v3 = vcombine.low %v3497_v35, %v3480_v48  ;;  %v3524_v9 = vrot.slane %v1508_v8, %v3435_v43  ;;  %v1915_v28 = vcombine.low %v3461_v52, %v3494_v13  ;;  %v3531_v41 = vmul.f32 %v3442_v53, %v3356_v51 }
 0x3ce   : > { %v2665_v54 = vpop.eup %2664  ;;  %v1803_v31 = vrot.slane %v1795_v38, %v3435_v43  ;;  %v1796_v15 = vcombine.high %v1483_v5, %v1487_v42 }
 0x3cf   : > { %v2667_v37 = vpop.eup %2666  ;;  %v1473_v50 = vmul.f32 %v2665_v54, %v3399_v22  ;;  %v1531_v54 = vrot.slane %v1523_v3, %v3435_v43 }
 0x3d0   : > { %v2669_v24 = vpop.eup %2668 }
 0x3d1   : > { %v2671_v7 = vpop.eup %2670  ;;  %v1539_v22 = vcombine.low %v1469_v2, %v1473_v50  ;;  %v3537_v57 = vmul.f32 %v2669_v24, %v3393_v44  ;;  %v1540_v53 = vcombine.high %v1469_v2, %v1473_v50 }
 0x3d2   : > { %v2673_v45 = vpop.eup %2672  ;;  %v3540_v39 = vmul.f32 %v2671_v7, %v3401_v29  ;;  %v1810_v7 = vrot.slane %v1796_v15, %v3435_v43 }
 0x3d3   : > { %v2675_v33 = vpop.eup %2674  ;;  %v1489_v23 = vmul.f32 %v2673_v45, %v3407_v46  ;;  %v1547_v46 = vrot.slane %v1539_v22, %v3435_v43  ;;  %v1931_v42 = vcombine.low %v3531_v41, %v3537_v57  ;;  %v1554_v5 = vrot.slane %v1540_v53, %v3435_v43 }
 0x3d4   : > { %v3519_v21 = vmul.f32 %v2675_v33, %v3409_v58  ;;  %v2677_v60 = vpop.eup %2676  ;;  %v3534_v58 = vmul.f32 %v2667_v37, %v3385_v12  ;;  %v3572_v22 = vrot.slane %v1915_v28, %v3435_v43 }
 0x3d5   : > { %v1811_v25 = vcombine.low %v1485_v49, %v1489_v23  ;;  %v1812_v10 = vcombine.high %v1485_v49, %v1489_v23  ;;  %v2679_v27 = vpop.eup %2678  ;;  %v3546_v51 = vmul.f32 %v2677_v60, %v3366_v62  ;;  %v1588_v37 = vcombine.high %v1531_v54, %v1547_v46 }
 0x3d6   : > { %v1675_v44 = vcombine.low %v3534_v58, %v3519_v21  ;;  %v3555_v8 = vmul.f32 %v2679_v27, %v3376_v16  ;;  %v1643_v62 = vcombine.low %v3464_v1, %v3516_v34  ;;  %v1524_v16 = vcombine.high %v3497_v35, %v3480_v48 }
 0x3d7   : > { %v2681_v19 = vpop.eup %2680  ;;  %v1819_v30 = vrot.slane %v1811_v25, %v3435_v43  ;;  %v1826_v24 = vrot.slane %v1812_v10, %v3435_v43  ;;  %v1602_v38 = vrot.slane %v1588_v37, %v3454_v17  ;;  %v3584_v48 = vrot.slane %v1931_v42, %v3435_v43 }
 0x3d8   : > { %v3549_v12 = vmul.f32 %v2681_v19, %v3415_v40  ;;  %v1659_v40 = vcombine.low %v3546_v51, %v3540_v39  ;;  %v3577_v33 = vrot.slane %v1675_v44, %v3435_v43  ;;  %v3590_v60 = vrot.slane %v1643_v62, %v3435_v43 }
 0x3d9   : > { %v1860_v29 = vcombine.high %v1803_v31, %v1819_v30  ;;  %v1859_v36 = vcombine.low %v1803_v31, %v1819_v30  ;;  %v1875_v3 = vcombine.low %v1810_v7, %v1826_v24  ;;  %v1570_v10 = vrot.slane %v1556_v56, %v3454_v17 }
 0x3da   : > { %v1947_v45 = vcombine.low %v3555_v8, %v3549_v12  ;;  %v3593_v25 = vrot.slane %v1659_v40, %v3435_v43  ;;  %v1538_v28 = vrot.slane %v1524_v16, %v3435_v43  ;;  %v1587_v27 = vcombine.low %v1531_v54, %v1547_v46 }
 0x3db   : > { %v1874_v2 = vrot.slane %v1860_v29, %v3454_v17  ;;  %v3565_v50 = vrot.slane %v1859_v36, %v3454_v17  ;;  %v1555_v19 = vcombine.low %v3467_v20, %v3485_v6  ;;  %v3604_v30 = vrot.slane %v1627_v26, %v3435_v43 }
 0x3dc   : > { %v3587_v35 = vrot.slane %v1947_v45, %v3435_v43  ;;  %v1723_v15 = vcombine.low %v3593_v25, %v3577_v33  ;;  %v1621_v44 = vcombine.low %v1570_v10, %v1602_v38  ;;  %v1883_v56 = vrot.slane %v1875_v3, %v3454_v17 }
 0x3dd   : > { %v1893_v49 = vcombine.low %v3501_v0, %v1874_v2  ;;  %v1892_v23 = vcombine.high %v3504_v32, %v3565_v50  ;;  %v1894_v53 = vcombine.high %v3501_v0, %v1874_v2  ;;  %v1603_v29 = vcombine.low %v1538_v28, %v1554_v5 }
 0x3de   : > { %v1995_v31 = vcombine.low %v3584_v48, %v3587_v35  ;;  %v1963_v46 = vcombine.low %v3491_v55, %v3572_v22  ;;  %v1691_v20 = vcombine.low %v3604_v30, %v3590_v60  ;;  %v1851_v6 = vrot.slane %v1843_v59, %v3454_v17 }
 0x3df   : > { %2047 = vrot.lane.b32.xlu1 %v1893_v49, %s2821_s26  ;;  %2039 = vrot.lane.b32.xlu0 %v1892_v23, %s2825_s7  ;;  %v1571_v0 = vcombine.low %v3488_v11, %v3524_v9  ;;  %v3623_v26 = vrot.slane %v1587_v27, %v3454_v17  ;;  %v3626_v54 = vrot.slane %v1555_v19, %v3454_v17 }
 0x3e0   : > { %v3629_v36 = vrot.slane %v1995_v31, %v3454_v17  ;;  %v3632_v37 = vrot.slane %v1723_v15, %v3454_v17  ;;  %v1895_v42 = vcombine.low %v1851_v6, %v1883_v56  ;;  %v1622_v62 = vcombine.high %v1570_v10, %v1602_v38 }
 0x3e1   : > { %v1611_v40 = vrot.slane %v1603_v29, %v3454_v17  ;;  %v1876_v59 = vcombine.high %v1810_v7, %v1826_v24  ;;  %v3636_v2 = vrot.slane %v1963_v46, %v3454_v17  ;;  %v3639_v16 = vrot.slane %v1691_v20, %v3454_v17 }
 0x3e2   : > { %v1891_v45 = vcombine.low %v3504_v32, %v3565_v50  ;;  %v1579_v49 = vrot.slane %v1571_v0, %v3454_v17  ;;  %v1844_v23 = vcombine.high %v3470_v47, %v3476_v61  ;;  %v1619_v24 = vcombine.low %v3626_v54, %v3623_v26 }
 0x3e3   : > { %2055 = vrot.lane.b32.xlu1 %v1894_v53, %s2826_s8  ;;  %2045 = vrot.lane.b32.xlu0 %v1621_v44, %s2821_s26  ;;  %v2027_v7 = vcombine.low %v3636_v2, %v3629_v36  ;;  %v1755_v38 = vcombine.low %v3639_v16, %v3632_v37  ;;  %v1896_v3 = vcombine.high %v1851_v6, %v1883_v56 }
 0x3e4   : > { %v1623_v10 = vcombine.low %v1579_v49, %v1611_v40  ;;  %v3655_v27 = vrot.slane %v1876_v59, %v3454_v17  ;;  %v1604_v19 = vcombine.high %v1538_v28, %v1554_v5  ;;  %v3660_v47 = vrot.slane %v1844_v23, %v3454_v17 }
 0x3e5   : > { %v1572_v61 = vcombine.high %v3488_v11, %v3524_v9  ;;  %v1624_v15 = vcombine.high %v1579_v49, %v1611_v40  ;;  %v1620_v28 = vcombine.high %v3626_v54, %v3623_v26  ;;  %v1676_v44 = vcombine.high %v3534_v58, %v3519_v21 }
 0x3e6   : > { %v1897_v31 = vcombine.low %v3660_v47, %v3655_v27  ;;  %v1618_v53 = vrot.slane %v1604_v19, %v3454_v17  ;;  %v1724_v11 = vcombine.high %v3593_v25, %v3577_v33  ;;  %v1996_v9 = vcombine.high %v3584_v48, %v3587_v35 }
 0x3e7   : > { %2063 = vrot.lane.b32.xlu1 %v1895_v42, %s2822_s27  ;;  %2053 = vrot.lane.b32.xlu0 %v1622_v62, %s2826_s8  ;;  %v1586_v5 = vrot.slane %v1572_v61, %v3454_v17  ;;  %v1948_v29 = vcombine.high %v3555_v8, %v3549_v12  ;;  %v1692_v46 = vcombine.high %v3604_v30, %v3590_v60 }
 0x3e8   : > { %v1964_v20 = vcombine.high %v3491_v55, %v3572_v22  ;;  %v1644_v6 = vcombine.high %v3464_v1, %v3516_v34  ;;  %v1660_v21 = vcombine.high %v3546_v51, %v3540_v39  ;;  %v1916_v58 = vcombine.high %v3461_v52, %v3494_v13 }
 0x3e9   : > { %v1625_v56 = vcombine.low %v1586_v5, %v1618_v53  ;;  %v1932_v12 = vcombine.high %v3531_v41, %v3537_v57  ;;  %v1626_v8 = vcombine.high %v1586_v5, %v1618_v53  ;;  %v1628_v55 = vcombine.high %v3452_v18, %v3473_v4 }
 0x3ea   : > { %v1690_v22 = vrot.slane %v1676_v44, %v3435_v43  ;;  %v1900_v1 = vcombine.high %v3445_v14, %v3438_v63  ;;  %v2028_v34 = vcombine.high %v3636_v2, %v3629_v36  ;;  %v1738_v39 = vrot.slane %v1724_v11, %v3454_v17 }
 0x3eb   : > { %2071 = vrot.lane.b32.xlu1 %v1896_v3, %s2817_s14  ;;  %2061 = vrot.lane.b32.xlu0 %v1623_v10, %s2822_s27  ;;  %v2010_v51 = vrot.slane %v1996_v9, %v3454_v17  ;;  %v1962_v52 = vrot.slane %v1948_v29, %v3435_v43  ;;  %v1706_v13 = vrot.slane %v1692_v46, %v3454_v17 }
 0x3ec   : > { %v1978_v41 = vrot.slane %v1964_v20, %v3454_v17  ;;  %v1658_v18 = vrot.slane %v1644_v6, %v3435_v43  ;;  %v1674_v63 = vrot.slane %v1660_v21, %v3435_v43  ;;  %v1930_v14 = vrot.slane %v1916_v58, %v3435_v43 }
 0x3ed   : > { %v1946_v4 = vrot.slane %v1932_v12, %v3435_v43  ;;  %v1642_v57 = vrot.slane %v1628_v55, %v3435_v43  ;;  %v1914_v33 = vrot.slane %v1900_v1, %v3435_v43  ;;  %v1757_v48 = vcombine.low %v1706_v13, %v1738_v39 }
 0x3ee   : > { %v2029_v35 = vcombine.low %v1978_v41, %v2010_v51  ;;  %v1739_v60 = vcombine.low %v1674_v63, %v1690_v22  ;;  %v1758_v42 = vcombine.high %v1706_v13, %v1738_v39  ;;  %v2030_v62 = vcombine.high %v1978_v41, %v2010_v51 }
 0x3ef   : > { %2079 = vrot.lane.b32.xlu1 %v1897_v31, %s2815_s5  ;;  %2069 = vrot.lane.b32.xlu0 %v1624_v15, %s2817_s14  ;;  %v2011_v25 = vcombine.low %v1946_v4, %v1962_v52  ;;  %v1707_v30 = vcombine.low %v1642_v57, %v1658_v18  ;;  %v1979_v0 = vcombine.low %v1914_v33, %v1930_v14 }
 0x3f0   : > { %v1747_v40 = vrot.slane %v1739_v60, %v3454_v17  ;;  %v1740_v10 = vcombine.high %v1674_v63, %v1690_v22  ;;  %v2012_v19 = vcombine.high %v1946_v4, %v1962_v52  ;;  %v1708_v61 = vcombine.high %v1642_v57, %v1658_v18 }
 0x3f1   : > { %v2019_v59 = vrot.slane %v2011_v25, %v3454_v17  ;;  %v1715_v43 = vrot.slane %v1707_v30, %v3454_v17  ;;  %v1987_v49 = vrot.slane %v1979_v0, %v3454_v17  ;;  %v1980_v31 = vcombine.high %v1914_v33, %v1930_v14 }
 0x3f2   : > { %v1754_v5 = vrot.slane %v1740_v10, %v3454_v17  ;;  %v1722_v44 = vrot.slane %v1708_v61, %v3454_v17  ;;  %v1756_v46 = vcombine.high %v3639_v16, %v3632_v37  ;;  %v1898_v20 = vcombine.high %v3660_v47, %v3655_v27 }
 0x3f3   : > { %2037 = vrot.lane.b32.xlu1 %v1620_v28, %s2825_s7  ;;  %2077 = vrot.lane.b32.xlu0 %v1625_v56, %s2815_s5  ;;  %v1759_v23 = vcombine.low %v1715_v43, %v1747_v40  ;;  %v2031_v3 = vcombine.low %v1987_v49, %v2019_v59  ;;  %v1760_v15 = vcombine.high %v1715_v43, %v1747_v40 }
 0x3f4   : > { %v2032_v53 = vcombine.high %v1987_v49, %v2019_v59  ;;  %v2026_v28 = vrot.slane %v2012_v19, %v3454_v17  ;;  %v1994_v56 = vrot.slane %v1980_v31, %v3454_v17  ;;  %v1761_v11 = vcombine.low %v1722_v44, %v1754_v5 }
 0x3f5   : > { %v1762_v29 = vcombine.high %v1722_v44, %v1754_v5 }
 0x3f6   : > { %v2033_v9 = vcombine.low %v1994_v56, %v2026_v28  ;;  %v2034_v17 = vcombine.high %v1994_v56, %v2026_v28 }
 0x3f7   : > { %2085 = vrot.lane.b32.xlu0 %v1626_v8, %s2818_s17  ;;  %2095 = vrot.lane.b32.xlu1 %v2028_v34, %s2825_s7 }
 0x3fb   : > { %2101 = vrot.lane.b32.xlu0 %v1757_v48, %s2821_s26  ;;  %2103 = vrot.lane.b32.xlu1 %v2029_v35, %s2821_s26  ;;  %s2744_s26 = scalar_lea.vmem %s2743_s24, 1024 }
 0x3ff   : > { %2109 = vrot.lane.b32.xlu0 %v1758_v42, %s2826_s8  ;;  %2111 = vrot.lane.b32.xlu1 %v2030_v62, %s2826_s8 }
 0x403   : > { %2117 = vrot.lane.b32.xlu0 %v1759_v23, %s2822_s27  ;;  %2119 = vrot.lane.b32.xlu1 %v2031_v3, %s2822_s27 }
 0x407   : > { %2125 = vrot.lane.b32.xlu0 %v1760_v15, %s2817_s14  ;;  %2127 = vrot.lane.b32.xlu1 %v2032_v53, %s2817_s14  ;;  %s2185_s14 = scalar_lea.sflag [#allocation4], %s3004_s16 }
 0x40b   : > { %2133 = vrot.lane.b32.xlu0 %v1761_v11, %s2815_s5  ;;  %2135 = vrot.lane.b32.xlu1 %v2033_v9, %s2815_s5 }
 0x40f   : > { %2141 = vrot.lane.b32.xlu0 %v1762_v29, %s2818_s17  ;;  %2093 = vrot.lane.b32.xlu1 %v1756_v46, %s2825_s7 }
 0x413   : > { %2087 = vrot.lane.b32.xlu1 %v1898_v20, %s2818_s17 }
 0x417   : > { %2143 = vrot.lane.b32.xlu1 %v2034_v17, %s2818_s17  ;;  %s2738_s17 = scalar_lea.vmem %s3783_s29, 512 }
 0x418   : > { %p2739_p13 = scmp.ne.s32.totalorder %s3783_s29, %s2738_s17  ;;  %p2746_p0 = scmp.lt.s32.totalorder %s2744_s26, %s2738_s17 }
 0x41a   : > { %p2740_p12 = pnand %p2739_p13, %p3850_p1  ;;  %p2747_p2 = por %p2746_p0, %p2745_p10 }
 0x41c   : > { %p2741_p7 = pneg %p2740_p12 }
 0x41e   : > { %p2748_p4 = pnand %p2747_p2, %p2741_p7 }
 0x451   : > { %v2048_v6 = vpop.permute.xlu1 %2047  ;;  %v2040_v21 = vpop.permute.xlu0 %2039 }
 0x452   : > { %v2148_v0 = vsel %vm1138_vm3, %v1891_v45, %v2040_v21 }
 0x453   : > { %v2150_v42 = vsel %vm233_vm0, %v2148_v0, %v2048_v6 }
 0x455   : > { %v2056_v58 = vpop.permute.xlu1 %2055  ;;  %v2046_v12 = vpop.permute.xlu0 %2045 }
 0x456   : > { %v2153_v59 = vsel %vm2151_vm4, %v2150_v42, %v2056_v58 }
 0x459   : > { %v2064_v8 = vpop.permute.xlu1 %2063  ;;  %v2054_v55 = vpop.permute.xlu0 %2053 }
 0x45a   : > { %v2156_v49 = vsel %vm2154_vm5, %v2153_v59, %v2064_v8 }
 0x45d   : > { %v2072_v22 = vpop.permute.xlu1 %2071  ;;  %v2062_v1 = vpop.permute.xlu0 %2061 }
 0x45e   : > { %v2159_v32 = vsel %vm2157_vm6, %v2156_v49, %v2072_v22 }
 0x461   : > { %v2080_v34 = vpop.permute.xlu1 %2079  ;;  %v2070_v39 = vpop.permute.xlu0 %2069 }
 0x462   : > { %v2162_v3 = vsel %vm2160_vm8, %v2159_v32, %v2080_v34 }
 0x465   : > { %v2038_v51 = vpop.permute.xlu1 %2037  ;;  %v2078_v52 = vpop.permute.xlu0 %2077 }
 0x466   : > { %v2147_v27 = vsel %vm1138_vm3, %v1619_v24, %v2038_v51 }
 0x467   : > { %v2149_v47 = vsel %vm233_vm0, %v2147_v27, %v2046_v12 }
 0x468   : > { %v2152_v13 = vsel %vm2151_vm4, %v2149_v47, %v2054_v55 }
 0x469   : > { %v2155_v41 = vsel %vm2154_vm5, %v2152_v13, %v2062_v1  ;;  %v2096_v18 = vpop.permute.xlu1 %2095  ;;  %v2086_v63 = vpop.permute.xlu0 %2085 }
 0x46a   : > { %v2158_v14 = vsel %vm2157_vm6, %v2155_v41, %v2070_v39  ;;  %v2167_v50 = vsel %vm1138_vm3, %v2027_v7, %v2096_v18 }
 0x46b   : > { %v2161_v26 = vsel %vm2160_vm8, %v2158_v14, %v2078_v52 }
 0x46c   : > { %v2164_v54 = vsel %vm2163_vm7, %v2161_v26, %v2086_v63 }
 0x46d   : > { %2180 = vst [vmem:[%s3751_s3] sm:$0xff] %v2164_v54  ;;  %v2104_v24 = vpop.permute.xlu1 %2103  ;;  %v2102_v4 = vpop.permute.xlu0 %2101 }
 0x46e   : > { %v2169_v37 = vsel %vm233_vm0, %v2167_v50, %v2104_v24 }
 0x471   : > { %v2112_v57 = vpop.permute.xlu1 %2111  ;;  %v2110_v33 = vpop.permute.xlu0 %2109 }
 0x472   : > { %v2171_v10 = vsel %vm2151_vm4, %v2169_v37, %v2112_v57 }
 0x475   : > { %v2120_v48 = vpop.permute.xlu1 %2119  ;;  %v2118_v35 = vpop.permute.xlu0 %2117 }
 0x476   : > { %v2173_v2 = vsel %vm2154_vm5, %v2171_v10, %v2120_v48 }
 0x479   : > { %v2128_v60 = vpop.permute.xlu1 %2127  ;;  %v2126_v25 = vpop.permute.xlu0 %2125 }
 0x47a   : > { %v2175_v31 = vsel %vm2157_vm6, %v2173_v2, %v2128_v60 }
 0x47d   : > { %v2136_v30 = vpop.permute.xlu1 %2135  ;;  %v2134_v62 = vpop.permute.xlu0 %2133 }
 0x47e   : > { %v2177_v53 = vsel %vm2160_vm8, %v2175_v31, %v2136_v30 }
 0x481   : > { %v2094_v40 = vpop.permute.xlu1 %2093  ;;  %v2142_v61 = vpop.permute.xlu0 %2141 }
 0x482   : > { %v2166_v43 = vsel %vm1138_vm3, %v1755_v38, %v2094_v40 }
 0x483   : > { %v2168_v23 = vsel %vm233_vm0, %v2166_v43, %v2102_v4 }
 0x484   : > { %v2170_v45 = vsel %vm2151_vm4, %v2168_v23, %v2110_v33 }
 0x485   : > { %v2172_v16 = vsel %vm2154_vm5, %v2170_v45, %v2118_v35  ;;  %v2088_v38 = vpop.permute.xlu1 %2087 }
 0x486   : > { %v2174_v19 = vsel %vm2157_vm6, %v2172_v16, %v2126_v25  ;;  %v2165_v36 = vsel %vm2163_vm7, %v2162_v3, %v2088_v38 }
 0x487   : > { %v2176_v7 = vsel %vm2160_vm8, %v2174_v19, %v2134_v62  ;;  %2182 = vst [vmem:[%s3751_s3 + $0x10] sm:$0xff] %v2165_v36 }
 0x488   : > { %v2178_v15 = vsel %vm2163_vm7, %v2176_v7, %v2142_v61 }
 0x489   : > { %2181 = vst [vmem:[%s3751_s3 + $0x8] sm:$0xff] %v2178_v15  ;;  %v2144_v5 = vpop.permute.xlu1 %2143 }
 0x48a   : > { %v2179_v28 = vsel %vm2163_vm7, %v2177_v53, %v2144_v5 }
 0x48b   : > { %2183 = vst [vmem:[%s3751_s3 + $0x18] sm:$0xff] %v2179_v28 }
 0x48c   : > { %2751 = shalt.err (!%p2748_p4)
}
 0x48d   : > { %s2752_s27 = scalar_lea.hbm %s3792_s6, 512  ;;  %s2756_s8 = scalar_lea.hbm %s3840_s2, 1024 }
 0x48e   : > { %p2753_p9 = scmp.ne.s32.totalorder %s3792_s6, %s2752_s27  ;;  %p2757_p5 = scmp.lt.s32.totalorder %s3792_s6, %s3840_s2 }
 0x48f   : > { %p2758_p8 = scmp.lt.s32.totalorder %s2756_s8, %s2752_s27 }
 0x490   : > { %p2754_p11 = pnand %p2753_p9, %p3850_p1 }
 0x491   : > { %p2759_p6 = por %p2758_p8, %p2757_p5 }
 0x492   : > { %p2755_p3 = pneg %p2754_p11 }
 0x494   : > { %p2760_p13 = pnand %p2759_p6, %p2755_p3 }
 0x496   : > { %2763 = shalt.err (!%p2760_p13)
}
 0x497   : > { %s2832_s19 = smov 256  }
 0x498   : > { %2481 = dma.vmem_to_hbm [thread:$0]  (%p3850_p1), %s3783_s29, 512, %s3792_s6, %s2185_s14, %s2832_s19, %s2832_s19, %s2825_s7  }
 0x499 PF: > { %s2213_s3 = sand.u32 1, %s2794_s9   ;;  %p3851_p12 = scmp.ne.s32.totalorder %s3846_s22, 0 }
 0x49a   : > { %p3852_p7 = scmp.ge.s32.totalorder %s2806_s12, 2  ;;  %s2214_s20 = scalar_lea.sflag [#allocation4], %s2213_s3 }
 0x49c   : > { %p2491_p10 = pnand %p3852_p7, %p3851_p12 }
 0x49e   : > { %p2492_p0 = pneg %p2491_p10 }
 0x4a0   : > { %2789 = dma.done.wait (%p2492_p0), %s2214_s20, 512  }
 0x4a1   : > { %2791 = vsyncadd (%p2492_p0), %s2214_s20, 4294966784  ;;  %p18_p2 = scmp.ge.s32.totalorder %s2873_s15, 4   ;;  %s3853_s9 = smov %s2798_s10 }
 0x4a2   : > { %s3854_s10 = smov %s2802_s11  ;;  %s3855_s11 = smov %s2885_s18 }
 0x4a3   : > { %s3856_s12 = smov %s2873_s15  ;;  %20 = sbr.rel (!%p18_p2) target bundleno = 7 (0x7), region = 86 }
 0x4a8   :  { %2219 = vsyncpa [#allocation3], 1 }
 0x4a9   :  { %2221 = vsyncpa [#allocation3 + $0x1], 1 }
 0x4aa   :  { %2222 = vsyncpa [#allocation6], 1 }
 0x4ab   :  { %2224 = vsyncpa [#allocation6 + $0x1], 1 }
 0x4ac   :  { %2225 = vsyncpa [#allocation4], 1 }
 0x4ad   :  { %2227 = vsyncpa [#allocation4 + $0x1], 1 }

</bundles_post_ra>
